<compile_context>
chip_gen: v7x
topology: tpu7x:2x2x1
jax: 0.10.0
libtpu: 0.0.40
codegen_flags: <defaults>
</compile_context>

<pallas_src>
import functools

import jax
import jax.numpy as jnp
from jax import lax
from jax.experimental import pallas as pl
from jax.experimental.pallas import tpu as pltpu

EPS = 1e-8  # PyTorch RMSNorm eps (added OUTSIDE the sqrt, per the module)


def _pick_tile(n, candidates):
    for c in candidates:
        if c <= n and n % c == 0:
            return c
    return n


def _vmem_limit_bytes():
    # ~62% of physical VMEM: ~40 MiB on v7x (64 MiB), ~80 MiB on v5e/v6e (128 MiB).
    try:
        cap = pltpu.get_tpu_info().vmem_capacity_bytes
        return int(cap * 5 // 8)
    except Exception:
        return 48 * 1024 * 1024


def _rmsnorm(x, g, d):
    # exact PyTorch RMSNorm semantics: eps added outside the sqrt
    norm = jnp.sqrt(jnp.sum(x * x, axis=-1, keepdims=True))
    inv = pl.reciprocal(norm * (float(d) ** -0.5) + EPS, approx=True)
    return g * (x * inv)


# ----------------- kernel 1: RMSNorm1 + qkv projection, grid (B, T//tq) -----------------
def prenorm_qkv_kernel(x_ref, g1_ref, wqkv_ref, x1_ref, qkv_ref):
    x = x_ref[0].astype(jnp.float32)              # (tq, D)
    d = x.shape[-1]
    x1 = _rmsnorm(x, g1_ref[0], d)                # f32
    x1_ref[0] = x1.astype(x1_ref.dtype)           # bf16 residual (halved HBM traffic)
    qkv = jnp.dot(x1.astype(wqkv_ref.dtype), wqkv_ref[...],
                  preferred_element_type=jnp.float32)
    qkv_ref[0] = qkv.astype(qkv_ref.dtype)        # bf16 activations for attention


# ----------------- kernel 2: softmax attention, one (batch, head-pair) per program ------
def attention_kernel(q_ref, k_ref, v_ref, o_ref, *, n_heads_per_block):
    # blocks are (1, T, n_heads_per_block*hd); lane width is a multiple of 128
    hw = q_ref.shape[-1]
    hd = hw // n_heads_per_block
    qall = q_ref[0]                               # (T, hw) bf16, scale pre-folded into wqkv
    kall = k_ref[0]
    vall = v_ref[0]
    for h in range(n_heads_per_block):            # tiny static loop (typically 2)
        lo, hi = h * hd, (h + 1) * hd
        q = qall[:, lo:hi]
        k = kall[:, lo:hi]
        v = vall[:, lo:hi]
        # q @ k^T without an explicit transpose op (contract last dims of both)
        s = lax.dot_general(q, k, (((1,), (1,)), ((), ())),
                            preferred_element_type=jnp.float32)   # (T, T) f32
        s = s - jnp.max(s, axis=-1, keepdims=True)
        p = jnp.exp(s)
        l = jnp.sum(p, axis=-1, keepdims=True)                    # (T, 1) f32
        o = jnp.dot(p.astype(v.dtype), v, preferred_element_type=jnp.float32)
        o = o * pl.reciprocal(l, approx=True)                     # normalize (T, hd)
        o_ref[0, :, lo:hi] = o.astype(o_ref.dtype)                # lands straight in (B,T,D)


# ----------------- kernel 3: out_proj + residual + RMSNorm2 + chunk-streamed FFN --------
def out_proj_ffn_kernel(attn_ref, x1_ref, wo_ref, bo_ref, g2_ref,
                        w1_ref, b1_ref, w2_ref, b2_ref, o_ref,
                        x3_scratch, acc_scratch):
    c = pl.program_id(2)

    @pl.when(c == 0)
    def _():
        d = x1_ref.shape[-1]
        a = jnp.dot(attn_ref[0], wo_ref[...],
                    preferred_element_type=jnp.float32) + bo_ref[0]
        x2 = x1_ref[0].astype(jnp.float32) + a    # residual 1 (adds ln_1(x), per the module)
        x3 = _rmsnorm(x2, g2_ref[0], d)
        x3_scratch[...] = x3.astype(x3_scratch.dtype)
        acc_scratch[...] = x3 + b2_ref[0]         # residual 2 + final bias, f32 accumulator

    # one dff-chunk of the FFN per grid step; weight DMA overlaps previous chunk's compute
    h = jnp.dot(x3_scratch[...], w1_ref[...],
                preferred_element_type=jnp.float32) + b1_ref[0]
    h = jax.nn.gelu(h, approximate=False)         # exact erf GELU (matches nn.GELU)
    acc_scratch[...] += jnp.dot(h.astype(w2_ref.dtype), w2_ref[...],
                                preferred_element_type=jnp.float32)

    @pl.when(c == pl.num_programs(2) - 1)
    def _():
        o_ref[0] = acc_scratch[...].astype(o_ref.dtype)


# ----------------- wrapper -----------------
def encoder_block(x, params, n_heads, *, seq_tile=None, ffn_chunk=None):
    b, t, d = x.shape
    assert d % n_heads == 0
    hd = d // n_heads
    g1, wqkv_t, wo_t, bo, g2, w1_t, b1, w2_t, b2 = params
    dff = w1_t.shape[-1]

    if seq_tile is None:
        seq_tile = _pick_tile(t, (256, 128, 64, 32, 16, 8))   # 256 fills v6e/v7x MXU depth
    if ffn_chunk is None:
        ffn_chunk = _pick_tile(dff, (512, 256, 128))
    n_seq = t // seq_tile
    n_chunks = dff // ffn_chunk

    # heads per attention block so the block lane width is a multiple of 128
    if hd % 128 == 0:
        hpb = 1
    elif 128 % hd == 0 and n_heads % (128 // hd) == 0:
        hpb = 128 // hd
    else:
        hpb = n_heads                                         # full-width fallback
    n_hblk = n_heads // hpb
    hw = hpb * hd

    # fold attention scale into the q-columns of the qkv weight; cast weights to bf16
    scale = float(hd) ** -0.5
    wqkv_b = jnp.concatenate([wqkv_t[:, :d] * scale, wqkv_t[:, d:]],
                             axis=-1).astype(jnp.bfloat16)
    wo_b = wo_t.astype(jnp.bfloat16)
    w1_b = w1_t.astype(jnp.bfloat16)
    w2_b = w2_t.astype(jnp.bfloat16)

    vmem = _vmem_limit_bytes()

    # ---- kernel 1: RMSNorm1 + qkv projection ----
    row2 = lambda width: pl.BlockSpec((1, seq_tile, width), lambda i, j: (i, j, 0))
    const2 = lambda r, c: pl.BlockSpec((r, c), lambda i, j: (0, 0))

    x1, qkv = pl.pallas_call(
        prenorm_qkv_kernel,
        grid=(b, n_seq),
        in_specs=[row2(d), const2(1, d), const2(d, 3 * d)],
        out_specs=[row2(d), row2(3 * d)],
        out_shape=[
            jax.ShapeDtypeStruct((b, t, d), jnp.bfloat16),     # x1 residual (bf16)
            jax.ShapeDtypeStruct((b, t, 3 * d), jnp.bfloat16), # qkv slab
        ],
        compiler_params=pltpu.CompilerParams(
            dimension_semantics=("parallel", "parallel"),
            vmem_limit_bytes=vmem),
    )(x, g1, wqkv_b)

    # ---- kernel 2: attention, one program per (batch, head-pair); q/k/v read straight
    #      from the qkv slab, output written straight into (B, T, D) ----
    def qkv_block(third):
        return pl.BlockSpec((1, t, hw),
                            lambda bb, hp, third=third: (bb, 0, third * n_hblk + hp))

    attn = pl.pallas_call(
        functools.partial(attention_kernel, n_heads_per_block=hpb),
        grid=(b, n_hblk),
        in_specs=[qkv_block(0), qkv_block(1), qkv_block(2)],
        out_specs=pl.BlockSpec((1, t, hw), lambda bb, hp: (bb, 0, hp)),
        out_shape=jax.ShapeDtypeStruct((b, t, d), jnp.bfloat16),
        compiler_params=pltpu.CompilerParams(
            dimension_semantics=("parallel", "parallel"),
            vmem_limit_bytes=vmem),
    )(qkv, qkv, qkv)

    # ---- kernel 3: out_proj + residual + RMSNorm2 + chunk-streamed FFN + residual ----
    row3 = lambda width: pl.BlockSpec((1, seq_tile, width), lambda i, j, c: (i, j, 0))
    const3 = lambda r, cc: pl.BlockSpec((r, cc), lambda i, j, c: (0, 0))

    out = pl.pallas_call(
        out_proj_ffn_kernel,
        grid=(b, n_seq, n_chunks),
        in_specs=[
            row3(d),                                               # attn
            row3(d),                                               # x1 (residual, bf16)
            const3(d, d),                                          # wo^T
            const3(1, d),                                          # bo
            const3(1, d),                                          # g2
            pl.BlockSpec((d, ffn_chunk), lambda i, j, c: (0, c)),  # w1^T chunk
            pl.BlockSpec((1, ffn_chunk), lambda i, j, c: (0, c)),  # b1 chunk
            pl.BlockSpec((ffn_chunk, d), lambda i, j, c: (c, 0)),  # w2^T chunk
            const3(1, d),                                          # b2
        ],
        out_specs=row3(d),
        out_shape=jax.ShapeDtypeStruct((b, t, d), x.dtype),
        scratch_shapes=[pltpu.VMEM((seq_tile, d), jnp.bfloat16),   # cached x3
                        pltpu.VMEM((seq_tile, d), jnp.float32)],   # FFN accumulator
        compiler_params=pltpu.CompilerParams(
            dimension_semantics=("parallel", "parallel", "arbitrary"),
            vmem_limit_bytes=vmem),
    )(attn, x1, wo_b, bo, g2, w1_b, b1, w2_b, b2)
    return out


# ----------------- plain-JAX reference (f32, mirrors the PyTorch module) -----------------
def reference(x, params, n_heads):
    b, t, d = x.shape
    hd = d // n_heads
    g1, wqkv_t, wo_t, bo, g2, w1_t, b1, w2_t, b2 = params

    def rms(z, g):
        norm = jnp.sqrt(jnp.sum(z * z, axis=-1, keepdims=True))
        return g * (z / (norm * (d ** -0.5) + EPS))

    x1 = rms(x, g1[0])
    qkv = x1 @ wqkv_t
    q, k, v = jnp.split(qkv, 3, axis=-1)
    q = q.reshape(b, t, n_heads, hd).transpose(0, 2, 1, 3)
    k = k.reshape(b, t, n_heads, hd).transpose(0, 2, 1, 3)
    v = v.reshape(b, t, n_heads, hd).transpose(0, 2, 1, 3)
    s = jnp.einsum("bhqd,bhkd->bhqk", q, k) * (hd ** -0.5)
    p = jax.nn.softmax(s, axis=-1)
    a = jnp.einsum("bhqk,bhkd->bhqd", p, v).transpose(0, 2, 1, 3).reshape(b, t, d)
    a = a @ wo_t + bo[0]
    x2 = x1 + a
    x3 = rms(x2, g2[0])
    h = jax.nn.gelu(x3 @ w1_t + b1[0], approximate=False)
    return x3 + (h @ w2_t + b2[0])


if __name__ == "__main__":
    # hd=64 -> head pairing (128-lane blocks); T=512 -> two seq tiles; dff=1024 -> two FFN chunks
    B, T, D, H = 2, 512, 256, 4

    key = jax.random.PRNGKey(0)
    ks = jax.random.split(key, 10)

    x = jax.random.normal(ks[0], (B, T, D), jnp.float32)

    # Deterministic synthetic parameters (PyTorch layouts, transposed for x @ W).
    g1 = 1.0 + 0.1 * jax.random.normal(ks[8], (1, D), jnp.float32)         # RMSNorm scales
    g2 = 1.0 + 0.1 * jax.random.normal(ks[9], (1, D), jnp.float32)
    wqkv_t = 0.02 * jax.random.normal(ks[1], (D, 3 * D), jnp.float32)      # in_proj (no bias)
    wo_t = 0.02 * jax.random.normal(ks[2], (D, D), jnp.float32)            # out_proj
    bo = 0.02 * jax.random.normal(ks[3], (1, D), jnp.float32)
    w1_t = 0.02 * jax.random.normal(ks[4], (D, 4 * D), jnp.float32)        # ffn linear 1
    b1 = 0.02 * jax.random.normal(ks[5], (1, 4 * D), jnp.float32)
    w2_t = 0.02 * jax.random.normal(ks[6], (4 * D, D), jnp.float32)        # ffn linear 2
    b2 = 0.02 * jax.random.normal(ks[7], (1, D), jnp.float32)

    params = (g1, wqkv_t, wo_t, bo, g2, w1_t, b1, w2_t, b2)

    out = jax.block_until_ready(encoder_block(x, params, H))
    ref = jax.block_until_ready(reference(x, params, H))

    assert out.shape == ref.shape and out.dtype == ref.dtype
    # bf16 matmul operands / bf16 residual + approx reciprocals -> relaxed tolerance vs f32 ref
    err = float(jnp.max(jnp.abs(out - ref)))
    assert jnp.allclose(out, ref, atol=2e-2, rtol=2e-2), f"mismatch vs reference, max|err|={err}"

    print("KERNEL_OK")
</pallas_src>

<mosaic_0001>
module attributes {stable_mosaic.version = 11 : i64} {
  func.func @prenorm_qkv_kernel(%arg0: i32, %arg1: i32, %arg2: memref<1x256x256xf32, #tpu.memory_space<vmem>>, %arg3: memref<1x256xf32, #tpu.memory_space<vmem>>, %arg4: memref<256x768xbf16, #tpu.memory_space<vmem>>, %arg5: memref<1x256x256xbf16, #tpu.memory_space<vmem>>, %arg6: memref<1x256x768xbf16, #tpu.memory_space<vmem>>) attributes {dimension_semantics = [#tpu.dimension_semantics<parallel>, #tpu.dimension_semantics<parallel>], iteration_bounds = array<i64: 2, 2>, scalar_prefetch = 0 : i64, scratch_operands = 0 : i64, tpu.core_type = #tpu.core_type<tc>, window_params = [{transform_indices = @transform_0, window_bounds = array<i64: 1, 256, 256>}, {pipeline_mode = #tpu.pipeline_mode<synchronous>, transform_indices = @transform_1, window_bounds = array<i64: 1, 256>}, {pipeline_mode = #tpu.pipeline_mode<synchronous>, transform_indices = @transform_2, window_bounds = array<i64: 256, 768>}, {transform_indices = @transform_3, window_bounds = array<i64: 1, 256, 256>}, {transform_indices = @transform_4, window_bounds = array<i64: 1, 256, 768>}]} {
    %c0 = arith.constant 0 : index
    %c0_0 = arith.constant 0 : index
    %c0_1 = arith.constant 0 : index
    %0 = vector.load %arg2[%c0, %c0_0, %c0_1] : memref<1x256x256xf32, #tpu.memory_space<vmem>>, vector<1x256x256xf32>
    %1 = vector.shape_cast %0 : vector<1x256x256xf32> to vector<256x256xf32>
    %c0_2 = arith.constant 0 : index
    %c0_3 = arith.constant 0 : index
    %2 = vector.load %arg3[%c0_2, %c0_3] : memref<1x256xf32, #tpu.memory_space<vmem>>, vector<1x256xf32>
    %3 = vector.shape_cast %2 : vector<1x256xf32> to vector<256xf32>
    %4 = arith.mulf %1, %1 : vector<256x256xf32>
    %cst = arith.constant dense<0.000000e+00> : vector<256xf32>
    %5 = vector.multi_reduction <add>, %4, %cst [1] : vector<256x256xf32> to vector<256xf32>
    %6 = vector.shape_cast %5 : vector<256xf32> to vector<256x1xf32>
    %7 = math.sqrt %6 : vector<256x1xf32>
    %cst_4 = arith.constant 6.250000e-02 : f32
    %8 = vector.broadcast %cst_4 : f32 to vector<256x1xf32>
    %9 = arith.mulf %7, %8 : vector<256x1xf32>
    %cst_5 = arith.constant 9.99999993E-9 : f32
    %10 = vector.broadcast %cst_5 : f32 to vector<256x1xf32>
    %11 = arith.addf %9, %10 : vector<256x1xf32>
    %12 = tpu.reciprocal %11 {approx = true} : vector<256x1xf32> -> vector<256x1xf32>
    %13 = vector.broadcast %12 : vector<256x1xf32> to vector<256x256xf32>
    %14 = arith.mulf %1, %13 : vector<256x256xf32>
    %15 = vector.shape_cast %3 : vector<256xf32> to vector<1x256xf32>
    %16 = vector.broadcast %15 : vector<1x256xf32> to vector<256x256xf32>
    %17 = arith.mulf %16, %14 : vector<256x256xf32>
    %18 = arith.truncf %17 : vector<256x256xf32> to vector<256x256xbf16>
    %c0_6 = arith.constant 0 : index
    %c0_7 = arith.constant 0 : index
    %c0_8 = arith.constant 0 : index
    %19 = vector.load %arg5[%c0_6, %c0_7, %c0_8] : memref<1x256x256xbf16, #tpu.memory_space<vmem>>, vector<1x256x256xbf16>
    %20 = vector.shape_cast %19 : vector<1x256x256xbf16> to vector<256x256xbf16>
    %21 = vector.shape_cast %18 : vector<256x256xbf16> to vector<1x256x256xbf16>
    tpu.vector_store %arg5[%c0_6, %c0_7, %c0_8], %21 {strides = array<i32>} : memref<1x256x256xbf16, #tpu.memory_space<vmem>>, vector<1x256x256xbf16>,
    %22 = arith.truncf %17 : vector<256x256xf32> to vector<256x256xbf16>
    %c0_9 = arith.constant 0 : index
    %c0_10 = arith.constant 0 : index
    %23 = vector.load %arg4[%c0_9, %c0_10] : memref<256x768xbf16, #tpu.memory_space<vmem>>, vector<256x768xbf16>
    %cst_11 = arith.constant dense<0.000000e+00> : vector<256x768xf32>
    %24 = tpu.matmul %22, %23, %cst_11 {dimension_numbers = #tpu.dot_dimension_numbers<[1], [0], [0], [1], [0, 0, 1, 1], [], []>} : vector<256x256xbf16>, vector<256x768xbf16>, vector<256x768xf32> -> vector<256x768xf32>
    %25 = arith.truncf %24 : vector<256x768xf32> to vector<256x768xbf16>
    %c0_12 = arith.constant 0 : index
    %c0_13 = arith.constant 0 : index
    %c0_14 = arith.constant 0 : index
    %26 = vector.load %arg6[%c0_12, %c0_13, %c0_14] : memref<1x256x768xbf16, #tpu.memory_space<vmem>>, vector<1x256x768xbf16>
    %27 = vector.shape_cast %26 : vector<1x256x768xbf16> to vector<256x768xbf16>
    %28 = vector.shape_cast %25 : vector<256x768xbf16> to vector<1x256x768xbf16>
    tpu.vector_store %arg6[%c0_12, %c0_13, %c0_14], %28 {strides = array<i32>} : memref<1x256x768xbf16, #tpu.memory_space<vmem>>, vector<1x256x768xbf16>,
    return
  }
  func.func @transform_0(%arg0: i32, %arg1: i32) -> (i32, i32, i32) {
    %c0_i32 = arith.constant 0 : i32
    %c0_i32_0 = arith.constant 0 : i32
    return %arg0, %arg1, %c0_i32 : i32, i32, i32
  }
  func.func @transform_1(%arg0: i32, %arg1: i32) -> (i32, i32) {
    %c0_i32 = arith.constant 0 : i32
    %c0_i32_0 = arith.constant 0 : i32
    %c0_i32_1 = arith.constant 0 : i32
    return %c0_i32, %c0_i32_0 : i32, i32
  }
  func.func @transform_2(%arg0: i32, %arg1: i32) -> (i32, i32) {
    %c0_i32 = arith.constant 0 : i32
    %c0_i32_0 = arith.constant 0 : i32
    %c0_i32_1 = arith.constant 0 : i32
    return %c0_i32, %c0_i32_0 : i32, i32
  }
  func.func @transform_3(%arg0: i32, %arg1: i32) -> (i32, i32, i32) {
    %c0_i32 = arith.constant 0 : i32
    %c0_i32_0 = arith.constant 0 : i32
    return %arg0, %arg1, %c0_i32 : i32, i32, i32
  }
  func.func @transform_4(%arg0: i32, %arg1: i32) -> (i32, i32, i32) {
    %c0_i32 = arith.constant 0 : i32
    %c0_i32_0 = arith.constant 0 : i32
    return %arg0, %arg1, %c0_i32 : i32, i32, i32
  }
}

</mosaic_0001>

<bundles_post_ra>
// kernel: tpu_custom_call.1
= control target key start
LH: loop header
LB: loop body
LE: loop exit
PB: predicated region body
PF: predicated region fallthrough
CT: control target
= control target key end

     0   :  { %s5627_s0 = inlined_call_operand.hbm [shape: f32[2,512,256], index: 0, kind: input, shape index: {}]   ;;  %s5628_s1 = inlined_call_operand.hbm [shape: f32[1,256], index: 1, kind: input, shape index: {}]   ;;  %s5629_s2 = inlined_call_operand.hbm [shape: bf16[256,768], index: 2, kind: input, shape index: {}]   ;;  %s5630_s3 = inlined_call_operand.hbm [shape: bf16[2,512,256], index: 3, kind: output, shape index: {0}]   ;;  %s5631_s4 = inlined_call_operand.hbm [shape: bf16[2,512,768], index: 4, kind: output, shape index: {1}]  }
   0x1   :  { %5641 = sst [smem:[#allocation18_spill]] %s5628_s1 }
   0x2   :  { %5642 = sst [smem:[#allocation19_spill]] %s5629_s2 }
   0x3   :  { %10 = vsyncpa [#allocation3], 0 }
   0x4   :  { %12 = vsyncpa [#allocation3 + $0x1], 0 }
   0x5   :  { %13 = vsyncpa [#allocation6], 0 }
   0x6   :  { %14 = vsyncpa [#allocation4], 0 }
   0x7   :  { %16 = vsyncpa [#allocation4 + $0x1], 0 }
   0x8   :  { %17 = vsyncpa [#allocation10], 0 }
   0x9   :  { %19 = vsyncpa [#allocation10 + $0x1], 0  ;;  %s4321_s15 = smov 0   ;;  %s4323_s16 = smov 0  }
   0xa   :  { %s4325_s17 = smov 0   ;;  %s4327_s18 = smov 0  }
   0xb   :  { %s4329_s19 = smov 0   ;;  %s4331_s20 = smov 0  }
   0xc   :  { %s4333_s21 = smov 0   ;;  %s4335_s22 = smov 0  }
   0xd LB: > { %5643 = sst [smem:[#allocation15_spill]] %s4273_s20  ;;  %s3198_s23 = sadd.s32 4294967295, %s4281_s22   ;;  %s4281_s22 = sphi %s4335_s22, %s25_s22   ;;  %s4277_s21 = sphi %s4333_s21, %s5670_s21   ;;  %s4273_s20 = sphi %s4331_s20, %s5665_s20   ;;  %s4269_s19 = sphi %s4329_s19, %s5669_s19   ;;  %s4265_s18 = sphi %s4327_s18, %s5664_s18   ;;  %s4261_s17 = sphi %s4325_s17, %s5668_s17   ;;  %s4257_s16 = sphi %s4323_s16, %s5667_s16   ;;  %s4253_s15 = sphi %s4321_s15, %s5666_s15  }
   0xe   : > { %s3199_s24 = sadd.s32 4294967294, %s4281_s22   ;;  %p53_p0 = scmp.ne.s32.totalorder %s4261_s17, %s4257_s16 }
   0xf   : > { %p54_p1 = scmp.eq.s32.totalorder %s4281_s22, 0  ;;  %p59_p2 = scmp.ne.s32.totalorder %s4257_s16, %s4253_s15 }
  0x10   : > { %p4369_p3 = scmp.eq.s32.totalorder %s3198_s23, 0  ;;  %p127_p4 = scmp.eq.s32.totalorder %s3198_s23, 3 }
  0x11   : > { %p4373_p5 = por %p54_p1, %p53_p0  ;;  %p133_p6 = scmp.eq.s32.totalorder %s3199_s24, 3 }
  0x12   : > { %s5644_s26 = scalar_select %p4369_p3, 1, 0 }
  0x13   : > { %p4379_p7 = por %p4369_p3, %p59_p2  ;;  %p4383_p8 = por %p127_p4, %p53_p0 }
  0x14   : > { %p4387_p9 = por %p133_p6, %p59_p2  ;;  %p3200_p10 = scmp.ge.s32.totalorder %s4281_s22, 1 }
  0x15   : > { %s5646_s28 = scalar_select %p4379_p7, 1, 0 }
  0x16   : > { %s5647_s29 = scalar_select %p4383_p8, 1, 0 }
  0x17   : > { %s5648_s30 = scalar_select %p4387_p9, 1, 0 }
  0x18   : > { %p168_p11 = scmp.lt.s32.totalorder %s4281_s22, 5  ;;  %s4283_s6 = smov [#allocation5]  }
  0x19   : > { %5649 = sst [smem:[#allocation16_spill]] %s5648_s30  ;;  %s181_s7 = sshll.u32 %s4283_s6, 4  ;;  %s182_s7 = int_to_ptr.vmem [resolvable:$true] %s181_s7 }
  0x1a   : > { %p4393_p12 = pnand %p3200_p10, %p168_p11  ;;  %p3647_p13 = scmp.lt.s32.totalorder %s4281_s22, 4 }
  0x1b   : > { %s4284_s9 = smov [#allocation7]   ;;  %s5653_s1 = sld [smem:[#allocation18_spill]] }
  0x1c   : > { %s5650_s5 = scalar_select %p4393_p12, 1, 0 }
  0x1d   : > { %p3627_p0 = pneg %p4393_p12  ;;  %p4402_p1 = pnand %p3647_p13, %p4373_p5 }
  0x1e   : > { %s191_s10 = sshll.u32 %s4284_s9, 4  ;;  %s4412_s10 = int_to_ptr.vmem [resolvable:$true] %s191_s10 }
  0x1f   : > { %s5651_s8 = scalar_select %p4402_p1, 1, 0 }
  0x20   : > { %p4408_p2 = pnand %p3627_p0, %p4369_p3 }
  0x21   : > { %s4061_s14 = scalar_lea.hbm %s5653_s1, 32 }
  0x22   : > { %p4062_p4 = scmp.ne.s32.totalorder %s5653_s1, %s4061_s14  ;;  %p4063_p5 = pneg %p4408_p2 }
  0x23   : > { %p4068_p11 = scmp.lt.u32.totalorder %s4061_s14, %s5653_s1 }
  0x24   : > { %p4064_p6 = pnand %p4063_p5, %p4062_p4 }
  0x26   : > { %p4065_p10 = pneg %p4064_p6 }
  0x28   : > { %p4070_p13 = pnand %p4068_p11, %p4065_p10 }
  0x2a   : > { %4073 = shalt.err (!%p4070_p13)
}
  0x2b   : > { %s4074_s9 = scalar_lea.vmem %s182_s7, 32  ;;  %p4082_p3 = scmp.lt.s32.totalorder %s182_s7, %s182_s7 }
  0x2c   : > { %p4075_p0 = scmp.ne.s32.totalorder %s182_s7, %s4074_s9  ;;  %p4083_p7 = scmp.lt.s32.totalorder %s4074_s9, %s4074_s9 }
  0x2e   : > { %p4077_p9 = pnand %p4075_p0, %p4063_p5  ;;  %p4084_p12 = por %p4083_p7, %p4082_p3 }
  0x30   : > { %p4078_p8 = pneg %p4077_p9 }
  0x32   : > { %p4085_p1 = pnand %p4084_p12, %p4078_p8 }
  0x34   : > { %4088 = shalt.err (!%p4085_p1)
}
  0x35   : > { %3630 = dma.hbm_to_vmem [thread:$0]  (!%p4408_p2), %s5653_s1, 32, %s182_s7, [#allocation6]  }
  0x36   : > { %s5654_s2 = sld [smem:[#allocation19_spill]] }
  0x3c   : > { %s4089_s24 = scalar_lea.hbm %s5654_s2, 12288 }
  0x3d   : > { %p4090_p9 = scmp.ne.s32.totalorder %s5654_s2, %s4089_s24  ;;  %p4096_p8 = scmp.lt.u32.totalorder %s4089_s24, %s5654_s2 }
  0x3f   : > { %p4092_p3 = pnand %p4090_p9, %p4063_p5 }
  0x41   : > { %p4093_p7 = pneg %p4092_p3 }
  0x43   : > { %p4098_p12 = pnand %p4096_p8, %p4093_p7 }
  0x45   : > { %4101 = shalt.err (!%p4098_p12)
}
  0x46   : > { %s4102_s7 = scalar_lea.vmem %s4412_s10, 12288  ;;  %p4110_p10 = scmp.lt.s32.totalorder %s4412_s10, %s4412_s10 }
  0x47   : > { %p4103_p1 = scmp.ne.s32.totalorder %s4412_s10, %s4102_s7  ;;  %p4111_p11 = scmp.lt.s32.totalorder %s4102_s7, %s4102_s7 }
  0x49   : > { %p4105_p4 = pnand %p4103_p1, %p4063_p5  ;;  %p4112_p13 = por %p4111_p11, %p4110_p10 }
  0x4b   : > { %p4106_p6 = pneg %p4105_p4 }
  0x4d   : > { %p4113_p0 = pnand %p4112_p13, %p4106_p6 }
  0x4f   : > { %4116 = shalt.err (!%p4113_p0)
}
  0x50   : > { %s4285_s25 = smov 384   ;;  %s4286_s12 = smov 24  }
  0x51   : > { %3633 = dma.hbm_to_vmem [thread:$0]  (!%p4408_p2), %s5654_s2, 12288, %s4412_s10, [#allocation6], %s4285_s25, %s4285_s25, %s4286_s12  }
  0x52   : > { %s34_s23 = sadd.s32 1, %s4273_s20  ;;  %s37_s24 = sadd.s32 1, %s4277_s21 }
  0x53   : > { %p35_p5 = scmp.ge.s32.totalorder %s34_s23, 2  ;;  %s205_s27 = sand.u32 1, %s4261_s17  }
  0x54   : > { %s3204_s6 = sshll.u32 %s205_s27, 9  ;;  %s3448_s7 = sshll.u32 %s4273_s20, 6 }
  0x55   : > { %s5672_s23 = smov (%p35_p5, %s34_s23), 0  ;;  %s5674_s24 = smov (!%p35_p5, %s37_s24), %s4277_s21 }
  0x56   : > { %5655 = sst [smem:[#allocation17_spill]] %s5672_s23  ;;  %s42_s9 = ssub.s32 %s4273_s20, %s5672_s23 }
  0x57   : > { %p39_p9 = scmp.ge.s32.totalorder %s5674_s24, 2  ;;  %s3207_s11 = sshll.u32 %s4277_s21, 7 }
  0x58   : > { %s209_s13 = scalar_lea.vmem [#allocation2], %s3204_s6  ;;  %s216_s25 = sadd.s32 %s3448_s7, %s3207_s11 }
  0x59   : > { %s219_s10 = sshll.u32 %s209_s13, 4  ;;  %s5676_s24 = smov (%p39_p9, %s5674_s24), 0  ;;  %s4473_s10 = int_to_ptr.vmem [resolvable:$true] %s219_s10 }
  0x5a   : > { %s41_s12 = ssub.s32 %s4277_s21, %s5676_s24  ;;  %s3208_s14 = sshll.u32 %s216_s25, 7 }
  0x5b   : > { %s43_s1 = sor.u32 %s42_s9, %s41_s12  ;;  %s4480_s23 = scalar_lea.hbm %s5627_s0, %s3208_s14 }
  0x5c   : > { %p44_p2 = scmp.eq.s32.totalorder %s43_s1, 0  ;;  %s5656_s6 = sadd.s32 1, %s4261_s17 }
  0x5d   : > { %s4487_s20 = scalar_lea.sflag [#allocation3], %s205_s27  ;;  %s4117_s7 = scalar_lea.hbm %s4480_s23, 8192 }
  0x5e   : > { %s4485_s13 = scalar_select %p44_p2, %s4261_s17, %s5656_s6  }
  0x5f   : > { %p4118_p3 = scmp.ne.s32.totalorder %s4480_s23, %s4117_s7  ;;  %p5657_p7 = scmp.ne.s32.totalorder %s5651_s8, 0 }
  0x60   : > { %s4122_s9 = scalar_lea.hbm %s5627_s0, 32768  ;;  %p4123_p4 = scmp.lt.u32.totalorder %s4480_s23, %s5627_s0 }
  0x61   : > { %p4119_p8 = pneg %p5657_p7  ;;  %p4124_p6 = scmp.lt.u32.totalorder %s4122_s9, %s4117_s7 }
  0x62   : > { %p4126_p11 = scmp.lt.u32.totalorder %s4117_s7, %s4480_s23 }
  0x63   : > { %p4120_p12 = pnand %p4119_p8, %p4118_p3  ;;  %p4125_p10 = por %p4124_p6, %p4123_p4 }
  0x65   : > { %p4121_p1 = pneg %p4120_p12  ;;  %p4127_p13 = por %p4126_p11, %p4125_p10 }
  0x67   : > { %p4128_p0 = pnand %p4127_p13, %p4121_p1 }
  0x69   : > { %4131 = shalt.err (!%p4128_p0)
}
  0x6a   : > { %s4132_s1 = scalar_lea.vmem %s4473_s10, 8192  ;;  %s4287_s27 = smov [#allocation2]  }
  0x6b   : > { %p4133_p5 = scmp.ne.s32.totalorder %s4473_s10, %s4132_s1  ;;  %s4137_s12 = sshll.u32 %s4287_s27, 4  ;;  %s4138_s12 = int_to_ptr.vmem [resolvable:$false] %s4137_s12 }
  0x6c   : > { %s4139_s14 = scalar_lea.vmem %s4138_s12, 16384  ;;  %p4140_p3 = scmp.lt.s32.totalorder %s4473_s10, %s4138_s12 }
  0x6d   : > { %p4135_p9 = pnand %p4133_p5, %p4119_p8  ;;  %p4141_p12 = scmp.lt.s32.totalorder %s4139_s14, %s4132_s1 }
  0x6f   : > { %p4136_p2 = pneg %p4135_p9  ;;  %p4142_p4 = por %p4141_p12, %p4140_p3 }
  0x71   : > { %p4143_p6 = pnand %p4142_p4, %p4136_p2 }
  0x73   : > { %4146 = shalt.err (!%p4143_p6)
}
  0x74   : > { %s4288_s6 = smov 256   ;;  %s4289_s7 = smov 16  }
  0x75   : > { %3637 = dma.hbm_to_vmem [thread:$0]  (!%p5657_p7), %s4480_s23, 8192, %s4473_s10, %s4487_s20, %s4288_s6, %s4288_s6, %s4289_s7  }
  0x76   : > { %p5658_p8 = scmp.ne.s32.totalorder %s5650_s5, 0 }
  0x77   : > { %s4518_s2 = sand.u32 (!%p5658_p8), 1, %s4257_s16   ;;  %p5659_p1 = scmp.ne.s32.totalorder (!%p5658_p8), %s5646_s28, 0 }
  0x78   : > { %231 = sbr.rel (%p5658_p8) target bundleno = 781 (0x30d), region = 32  ;;  %s3210_s30 = sshll.u32 (!%p5658_p8), %s4518_s2, 9 }
  0x79   : > { %s234_s9 = scalar_lea.sflag (!%p5658_p8), [#allocation3], %s4518_s2  ;;  %s4522_s11 = scalar_lea.vmem (!%p5658_p8), [#allocation2], %s3210_s30 }
  0x7f   : > { %4236 = dma.done.wait (%p5659_p1), %s234_s9, 8192  }
  0x80   : > { %4238 = vsyncadd (%p5659_p1), %s234_s9, 4294959104  ;;  %p5660_p7 = scmp.ne.s32.totalorder %s5644_s26, 0 }
  0x82   : > { %4240 = dma.done.wait (%p5660_p7), [#allocation6], 12320  }
  0x83   : > { %4242 = vsyncadd (%p5660_p7), [#allocation6], 4294954976  ;;  %v310_v0 = vld [vmem:[%s4522_s11 + $0x100] sm:$0xff]  ;;  %v311_v1 = vld [vmem:[%s4522_s11 + $0x108] sm:$0xff]  ;;  %s3213_s20 = sshll.u32 %s4518_s2, 8  ;;  %s3610_s28 = smul.u32 768, %s4518_s2 }
  0x84   : > { %v278_v2 = vld [vmem:[%s4522_s11] sm:$0xff]  ;;  %v375_v3 = vmul.f32 %v310_v0, %v310_v0  ;;  %v376_v4 = vmul.f32 %v311_v1, %v311_v1  ;;  %v279_v5 = vld [vmem:[%s4522_s11 + $0x8] sm:$0xff]  ;;  %v312_v7 = vld [vmem:[%s4522_s11 + $0x110] sm:$0xff]  ;;  %s4907_s26 = scalar_lea.vmem [#allocation8], %s3213_s20  ;;  %s3577_s8 = sshll.u32 %s4265_s18, 6 }
  0x85   : > { %v343_v6 = vmul.f32 %v278_v2, %v278_v2  ;;  %v313_v8 = vld [vmem:[%s4522_s11 + $0x118] sm:$0xff]  ;;  %v344_v9 = vmul.f32 %v279_v5, %v279_v5  ;;  %v377_v10 = vmul.f32 %v312_v7, %v312_v7  ;;  %v280_v12 = vld [vmem:[%s4522_s11 + $0x10] sm:$0xff]  ;;  %v282_v19 = vld [vmem:[%s4522_s11 + $0x20] sm:$0xff]  ;;  %s5433_s5 = scalar_lea.vmem [#allocation9], %s3610_s28  ;;  %s3441_s23 = sshll.u32 %s4269_s19, 7 }
  0x86   : > { %v378_v11 = vmul.f32 %v313_v8, %v313_v8  ;;  %v281_v13 = vld [vmem:[%s4522_s11 + $0x18] sm:$0xff]  ;;  %v284_v14 = vld [vmem:[%s4522_s11 + $0x30] sm:$0xff]  ;;  %v455_v15 = vadd.f32 %v376_v4, %v375_v3  ;;  %v345_v16 = vmul.f32 %v280_v12, %v280_v12  ;;  %v283_v20 = vld [vmem:[%s4522_s11 + $0x28] sm:$0xff]  ;;  %v347_v26 = vmul.f32 %v282_v19, %v282_v19  ;;  %s3035_s10 = sshll.u32 %s4907_s26, 4  ;;  %s3032_s25 = sadd.s32 %s3577_s8, %s3441_s23  ;;  %s5470_s10 = int_to_ptr.vmem [resolvable:$true] %s3035_s10 }
  0x87   : > { %v346_v17 = vmul.f32 %v281_v13, %v281_v13  ;;  %v285_v18 = vld [vmem:[%s4522_s11 + $0x38] sm:$0xff]  ;;  %v407_v21 = vadd.f32 %v344_v9, %v343_v6  ;;  %v349_v23 = vmul.f32 %v284_v14, %v284_v14  ;;  %v348_v27 = vmul.f32 %v283_v20, %v283_v20  ;;  %v316_v28 = vld [vmem:[%s4522_s11 + $0x130] sm:$0xff]  ;;  %v314_v30 = vld [vmem:[%s4522_s11 + $0x120] sm:$0xff]  ;;  %s3442_s1 = sshll.u32 %s3032_s25, 6  ;;  %s3014_s6 = scalar_lea.sflag [#allocation4], %s4518_s2 }
  0x88   : > { %456 = vadd.xlane.f32.xlu1 %v455_v15  ;;  %v458_v22 = vadd.f32 %v378_v11, %v377_v10  ;;  %v350_v24 = vmul.f32 %v285_v18, %v285_v18  ;;  %v317_v29 = vld [vmem:[%s4522_s11 + $0x138] sm:$0xff]  ;;  %v315_v31 = vld [vmem:[%s4522_s11 + $0x128] sm:$0xff]  ;;  %v381_v33 = vmul.f32 %v316_v28, %v316_v28  ;;  %v379_v36 = vmul.f32 %v314_v30, %v314_v30  ;;  %v288_v38 = vld [vmem:[%s4522_s11 + $0x50] sm:$0xff]  ;;  %s5476_s14 = scalar_lea.hbm %s5630_s3, %s3442_s1  ;;  %s4147_s7 = scalar_lea.vmem %s5470_s10, 4096 }
  0x89   : > { %408 = vadd.xlane.f32.xlu0 %v407_v21  ;;  %v410_v25 = vadd.f32 %v346_v17, %v345_v16  ;;  %v382_v34 = vmul.f32 %v317_v29, %v317_v29  ;;  %v413_v35 = vadd.f32 %v348_v27, %v347_v26  ;;  %v380_v37 = vmul.f32 %v315_v31, %v315_v31  ;;  %v289_v39 = vld [vmem:[%s4522_s11 + $0x58] sm:$0xff]  ;;  %v286_v40 = vld [vmem:[%s4522_s11 + $0x40] sm:$0xff]  ;;  %v287_v41 = vld [vmem:[%s4522_s11 + $0x48] sm:$0xff]  ;;  %p4148_p10 = scmp.ne.s32.totalorder %s5470_s10, %s4147_s7  ;;  %p5661_p11 = scmp.ne.s32.totalorder %s5647_s29, 0 }
  0x8a   : > { %v416_v32 = vadd.f32 %v350_v24, %v349_v23  ;;  %v353_v43 = vmul.f32 %v288_v38, %v288_v38  ;;  %v354_v44 = vmul.f32 %v289_v39, %v289_v39  ;;  %v351_v46 = vmul.f32 %v286_v40, %v286_v40  ;;  %v320_v48 = vld [vmem:[%s4522_s11 + $0x150] sm:$0xff]  ;;  %v321_v49 = vld [vmem:[%s4522_s11 + $0x158] sm:$0xff]  ;;  %v318_v50 = vld [vmem:[%s4522_s11 + $0x140] sm:$0xff]  ;;  %s4290_s30 = smov [#allocation8]  }
  0x8b   : > { %v464_v42 = vadd.f32 %v382_v34, %v381_v33  ;;  %v461_v45 = vadd.f32 %v380_v37, %v379_v36  ;;  %v352_v47 = vmul.f32 %v287_v41, %v287_v41  ;;  %v319_v51 = vld [vmem:[%s4522_s11 + $0x148] sm:$0xff]  ;;  %v385_v53 = vmul.f32 %v320_v48, %v320_v48  ;;  %v292_v58 = vld [vmem:[%s4522_s11 + $0x70] sm:$0xff]  ;;  %v293_v59 = vld [vmem:[%s4522_s11 + $0x78] sm:$0xff]  ;;  %p4149_p13 = pnand %p4148_p10, %p5661_p11  ;;  %s4151_s9 = sshll.u32 %s4290_s30, 4  ;;  %s4152_s9 = int_to_ptr.vmem [resolvable:$false] %s4151_s9 }
  0x8c   : > { %459 = vadd.xlane.f32.xlu1 %v458_v22  ;;  %v422_v52 = vadd.f32 %v354_v44, %v353_v43  ;;  %v386_v54 = vmul.f32 %v321_v49, %v321_v49  ;;  %v383_v56 = vmul.f32 %v318_v50, %v318_v50  ;;  %v384_v57 = vmul.f32 %v319_v51, %v319_v51  ;;  %v290_v60 = vld [vmem:[%s4522_s11 + $0x60] sm:$0xff]  ;;  %v291_v61 = vld [vmem:[%s4522_s11 + $0x68] sm:$0xff]  ;;  %v324_v62 = vld [vmem:[%s4522_s11 + $0x170] sm:$0xff]  ;;  %p4154_p5 = scmp.lt.s32.totalorder %s5470_s10, %s4152_s9 }
  0x8d   : > { %411 = vadd.xlane.f32.xlu0 %v410_v25  ;;  %v419_v55 = vadd.f32 %v352_v47, %v351_v46  ;;  %v325_v63 = vld [vmem:[%s4522_s11 + $0x178] sm:$0xff]  ;;  %v357_v1 = vmul.f32 %v292_v58, %v292_v58  ;;  %v358_v2 = vmul.f32 %v293_v59, %v293_v59  ;;  %v322_v3 = vld [vmem:[%s4522_s11 + $0x160] sm:$0xff]  ;;  %v355_v5 = vmul.f32 %v290_v60, %v290_v60  ;;  %v323_v9 = vld [vmem:[%s4522_s11 + $0x168] sm:$0xff]  ;;  %p4150_p0 = pneg %p4149_p13 }
  0x8e   : > { %v470_v0 = vadd.f32 %v386_v54, %v385_v53  ;;  %v467_v4 = vadd.f32 %v384_v57, %v383_v56  ;;  %v356_v6 = vmul.f32 %v291_v61, %v291_v61  ;;  %v3725_v7 = vld [vmem:[#allocation7 + $0x4] ss:$24 sps:$4 sm:$0xff]   ;;  %v3727_v8 = vld [vmem:[#allocation7] ss:$24 sps:$4 sm:$0xff]   ;;  %v3728_v10 = vld [vmem:[#allocation7 + $0x34] ss:$24 sps:$4 sm:$0xff]   ;;  %v389_v13 = vmul.f32 %v324_v62, %v324_v62 }
  0x8f   : > { %v296_v11 = vld [vmem:[%s4522_s11 + $0x90] sm:$0xff]  ;;  %1762 = vmatprep.subr.bf16.mxu0 %v3725_v7  ;;  %3578 = vmatprep.subr.bf16.mxu1 %v3725_v7  ;;  %v428_v12 = vadd.f32 %v358_v2, %v357_v1  ;;  %v390_v14 = vmul.f32 %v325_v63, %v325_v63  ;;  %v387_v17 = vmul.f32 %v322_v3, %v322_v3  ;;  %v297_v19 = vld [vmem:[%s4522_s11 + $0x98] sm:$0xff]  ;;  %v294_v20 = vld [vmem:[%s4522_s11 + $0x80] sm:$0xff] }
  0x90   : > { %417 = vadd.xlane.f32.xlu1 %v416_v32  ;;  %1763 = vmatpush1.bf16.msra.mxu0 %v3727_v8  ;;  %v3730_v15 = vld [vmem:[#allocation7 + $0x30] ss:$24 sps:$4 sm:$0xff]   ;;  %v425_v16 = vadd.f32 %v356_v6, %v355_v5  ;;  %v388_v18 = vmul.f32 %v323_v9, %v323_v9  ;;  %v3731_v22 = vld [vmem:[#allocation7 + $0x64] ss:$24 sps:$4 sm:$0xff]   ;;  %v361_v25 = vmul.f32 %v296_v11, %v296_v11  ;;  %v3733_v27 = vld [vmem:[#allocation7 + $0x60] ss:$24 sps:$4 sm:$0xff]  }
  0x91   : > { %414 = vadd.xlane.f32.xlu0 %v413_v35  ;;  %3594 = vmatpush1.bf16.msra.mxu1 %v3727_v8  ;;  %v295_v21 = vld [vmem:[%s4522_s11 + $0x88] sm:$0xff]  ;;  %v328_v23 = vld [vmem:[%s4522_s11 + $0x190] sm:$0xff]  ;;  %v476_v24 = vadd.f32 %v390_v14, %v389_v13  ;;  %v362_v26 = vmul.f32 %v297_v19, %v297_v19  ;;  %v359_v29 = vmul.f32 %v294_v20, %v294_v20  ;;  %v329_v31 = vld [vmem:[%s4522_s11 + $0x198] sm:$0xff] }
  0x92   : > { %1764 = vmatprep.subr.bf16.mxu0 %v3728_v10  ;;  %3579 = vmatprep.subr.bf16.mxu1 %v3728_v10  ;;  %v473_v28 = vadd.f32 %v388_v18, %v387_v17  ;;  %v360_v30 = vmul.f32 %v295_v21, %v295_v21  ;;  %v326_v32 = vld [vmem:[%s4522_s11 + $0x180] sm:$0xff]  ;;  %v327_v33 = vld [vmem:[%s4522_s11 + $0x188] sm:$0xff]  ;;  %v300_v35 = vld [vmem:[%s4522_s11 + $0xb0] sm:$0xff]  ;;  %v393_v38 = vmul.f32 %v328_v23, %v328_v23 }
  0x93   : > { %v3734_v34 = vld [vmem:[#allocation7 + $0x94] ss:$24 sps:$4 sm:$0xff]   ;;  %v434_v37 = vadd.f32 %v362_v26, %v361_v25  ;;  %v394_v39 = vmul.f32 %v329_v31, %v329_v31  ;;  %v298_v40 = vld [vmem:[%s4522_s11 + $0xa0] sm:$0xff]  ;;  %v3736_v41 = vld [vmem:[#allocation7 + $0x90] ss:$24 sps:$4 sm:$0xff]   ;;  %v391_v43 = vmul.f32 %v326_v32, %v326_v32  ;;  %v392_v44 = vmul.f32 %v327_v33, %v327_v33 }
  0x94   : > { %465 = vadd.xlane.f32.xlu1 %v464_v42  ;;  %1765 = vmatpush1.bf16.msra.mxu0 %v3730_v15  ;;  %v301_v36 = vld [vmem:[%s4522_s11 + $0xb8] sm:$0xff]  ;;  %v431_v42 = vadd.f32 %v360_v30, %v359_v29  ;;  %v332_v48 = vld [vmem:[%s4522_s11 + $0x1b0] sm:$0xff]  ;;  %v365_v51 = vmul.f32 %v300_v35, %v300_v35  ;;  %v330_v53 = vld [vmem:[%s4522_s11 + $0x1a0] sm:$0xff]  ;;  %v363_v56 = vmul.f32 %v298_v40, %v298_v40 }
  0x95   : > { %462 = vadd.xlane.f32.xlu0 %v461_v45  ;;  %3595 = vmatpush1.bf16.msra.mxu1 %v3730_v15  ;;  %v299_v45 = vld [vmem:[%s4522_s11 + $0xa8] sm:$0xff]  ;;  %v3739_v47 = vld [vmem:[#allocation7 + $0xc0] ss:$24 sps:$4 sm:$0xff]   ;;  %v482_v50 = vadd.f32 %v394_v39, %v393_v38  ;;  %v304_v59 = vld [vmem:[%s4522_s11 + $0xd0] sm:$0xff]  ;;  %v397_v63 = vmul.f32 %v332_v48, %v332_v48  ;;  %v395_v5 = vmul.f32 %v330_v53, %v330_v53 }
  0x96   : > { %1766 = vmatprep.subr.bf16.mxu0 %v3731_v22  ;;  %3580 = vmatprep.subr.bf16.mxu1 %v3731_v22  ;;  %v3737_v46 = vld [vmem:[#allocation7 + $0xc4] ss:$24 sps:$4 sm:$0xff]   ;;  %v364_v57 = vmul.f32 %v299_v45, %v299_v45  ;;  %v3740_v58 = vld [vmem:[#allocation7 + $0xf4] ss:$24 sps:$4 sm:$0xff]   ;;  %v3742_v61 = vld [vmem:[#allocation7 + $0xf0] ss:$24 sps:$4 sm:$0xff]   ;;  %v369_v11 = vmul.f32 %v304_v59, %v304_v59 }
  0x97   : > { %v333_v49 = vld [vmem:[%s4522_s11 + $0x1b8] sm:$0xff]  ;;  %v331_v54 = vld [vmem:[%s4522_s11 + $0x1a8] sm:$0xff]  ;;  %v302_v1 = vld [vmem:[%s4522_s11 + $0xc0] sm:$0xff] }
  0x98   : > { %423 = vadd.xlane.f32.xlu1 %v422_v52  ;;  %1767 = vmatpush1.bf16.msra.mxu0 %v3733_v27  ;;  %v366_v52 = vmul.f32 %v301_v36, %v301_v36  ;;  %v305_v60 = vld [vmem:[%s4522_s11 + $0xd8] sm:$0xff]  ;;  %v303_v2 = vld [vmem:[%s4522_s11 + $0xc8] sm:$0xff]  ;;  %v396_v6 = vmul.f32 %v331_v54, %v331_v54  ;;  %v336_v8 = vld [vmem:[%s4522_s11 + $0x1d0] sm:$0xff] }
  0x99   : > { %420 = vadd.xlane.f32.xlu0 %v419_v55  ;;  %3596 = vmatpush1.bf16.msra.mxu1 %v3733_v27  ;;  %v479_v55 = vadd.f32 %v392_v44, %v391_v43  ;;  %v3743_v3 = vld [vmem:[#allocation7 + $0x124] ss:$24 sps:$4 sm:$0xff]   ;;  %v3745_v7 = vld [vmem:[#allocation7 + $0x120] ss:$24 sps:$4 sm:$0xff]   ;;  %v368_v17 = vmul.f32 %v303_v2, %v303_v2  ;;  %v3746_v18 = vld [vmem:[#allocation7 + $0x154] ss:$24 sps:$4 sm:$0xff]   ;;  %v401_v23 = vmul.f32 %v336_v8, %v336_v8  ;;  %v888_v2 = vlaneseq }
  0x9a   : > { %1768 = vmatprep.subr.bf16.mxu0 %v3734_v34  ;;  %3581 = vmatprep.subr.bf16.mxu1 %v3734_v34  ;;  %v440_v62 = vadd.f32 %v366_v52, %v365_v51  ;;  %v337_v9 = vld [vmem:[%s4522_s11 + $0x1d8] sm:$0xff]  ;;  %v334_v13 = vld [vmem:[%s4522_s11 + $0x1c0] sm:$0xff]  ;;  %v335_v14 = vld [vmem:[%s4522_s11 + $0x1c8] sm:$0xff]  ;;  %v485_v15 = vadd.f32 %v396_v6, %v395_v5 }
  0x9b   : > { %v308_v19 = vld [vmem:[%s4522_s11 + $0xf0] sm:$0xff]  ;;  %v309_v20 = vld [vmem:[%s4522_s11 + $0xf8] sm:$0xff]  ;;  %v306_v25 = vld [vmem:[%s4522_s11 + $0xe0] sm:$0xff]  ;;  %v399_v29 = vmul.f32 %v334_v13, %v334_v13  ;;  %v400_v30 = vmul.f32 %v335_v14, %v335_v14  ;;  %v4596_v5 = vshrl.u32 %v888_v2, 7 }
  0x9c   : > { %471 = vadd.xlane.f32.xlu1 %v470_v0  ;;  %1769 = vmatpush1.bf16.msra.mxu0 %v3736_v41  ;;  %v398_v0 = vmul.f32 %v333_v49, %v333_v49  ;;  %v3748_v21 = vld [vmem:[#allocation7 + $0x150] ss:$24 sps:$4 sm:$0xff]   ;;  %v3749_v27 = vld [vmem:[#allocation7 + $0x184] ss:$24 sps:$4 sm:$0xff]   ;;  %v3751_v33 = vld [vmem:[#allocation7 + $0x180] ss:$24 sps:$4 sm:$0xff]   ;;  %v373_v35 = vmul.f32 %v308_v19, %v308_v19  ;;  %v374_v36 = vmul.f32 %v309_v20, %v309_v20 }
  0x9d   : > { %468 = vadd.xlane.f32.xlu0 %v467_v4  ;;  %3597 = vmatpush1.bf16.msra.mxu1 %v3736_v41  ;;  %v437_v4 = vadd.f32 %v364_v57, %v363_v56  ;;  %v307_v26 = vld [vmem:[%s4522_s11 + $0xe8] sm:$0xff]  ;;  %v340_v31 = vld [vmem:[%s4522_s11 + $0x1f0] sm:$0xff]  ;;  %v341_v32 = vld [vmem:[%s4522_s11 + $0x1f8] sm:$0xff]  ;;  %v491_v40 = vadd.f32 %v400_v30, %v399_v29  ;;  %v371_v41 = vmul.f32 %v306_v25, %v306_v25  ;;  %v894_v8 = vsub.s32 1, %v4596_v5 }
  0x9e   : > { %1770 = vmatprep.subr.bf16.mxu0 %v3737_v46  ;;  %3582 = vmatprep.subr.bf16.mxu1 %v3737_v46  ;;  %v488_v10 = vadd.f32 %v398_v0, %v397_v63  ;;  %v339_v38 = vld [vmem:[%s4522_s11 + $0x1e8] sm:$0xff]  ;;  %v452_v43 = vadd.f32 %v374_v36, %v373_v35  ;;  %v405_v44 = vmul.f32 %v340_v31, %v340_v31  ;;  %v3757_v52 = vld [vmem:[#allocation7 + $0x1e0] ss:$24 sps:$4 sm:$0xff]   ;;  %v890_v13 = vsub.s32 0, %v4596_v5 }
  0x9f   : > { %v3752_v39 = vld [vmem:[#allocation7 + $0x1b4] ss:$24 sps:$4 sm:$0xff]   ;;  %v406_v45 = vmul.f32 %v341_v32, %v341_v32  ;;  %v3754_v46 = vld [vmem:[#allocation7 + $0x1b0] ss:$24 sps:$4 sm:$0xff]   ;;  %v404_v49 = vmul.f32 %v339_v38, %v339_v38  ;;  %v3761_v56 = vld [vmem:[#allocation7 + $0x244] ss:$24 sps:$4 sm:$0xff]  }
  0xa0   : > { %429 = vadd.xlane.f32.xlu1 %v428_v12  ;;  %1771 = vmatpush1.bf16.msra.mxu0 %v3739_v47  ;;  %v370_v12 = vmul.f32 %v305_v60, %v305_v60  ;;  %v3758_v54 = vld [vmem:[#allocation7 + $0x214] ss:$24 sps:$4 sm:$0xff]   ;;  %v3763_v57 = vld [vmem:[#allocation7 + $0x240] ss:$24 sps:$4 sm:$0xff]   ;;  %v3766_v59 = vld [vmem:[#allocation7 + $0x270] ss:$24 sps:$4 sm:$0xff]  }
  0xa1   : > { %426 = vadd.xlane.f32.xlu0 %v425_v16  ;;  %3598 = vmatpush1.bf16.msra.mxu1 %v3739_v47  ;;  %v367_v16 = vmul.f32 %v302_v1, %v302_v1  ;;  %v500_v51 = vadd.f32 %v406_v45, %v405_v44  ;;  %v3767_v60 = vld [vmem:[#allocation7 + $0x2a4] ss:$24 sps:$4 sm:$0xff]   ;;  %v3772_v63 = vld [vmem:[#allocation7 + $0x2d0] ss:$24 sps:$4 sm:$0xff]   ;;  %v3778_v1 = vld [vmem:[#allocation7 + $0x14] ss:$24 sps:$4 sm:$0xff]  }
  0xa2   : > { %1772 = vmatprep.subr.bf16.mxu0 %v3740_v58  ;;  %3583 = vmatprep.subr.bf16.mxu1 %v3740_v58  ;;  %v446_v22 = vadd.f32 %v370_v12, %v369_v11  ;;  %v3764_v58 = vld [vmem:[#allocation7 + $0x274] ss:$24 sps:$4 sm:$0xff]  }
  0xa3   : > { %v3775_v0 = vld [vmem:[#allocation7 + $0xc] ss:$24 sps:$4 sm:$0xff]  }
  0xa4   : > { %477 = vadd.xlane.f32.xlu1 %v476_v24  ;;  %1773 = vmatpush1.bf16.msra.mxu0 %v3742_v61  ;;  %v402_v24 = vmul.f32 %v337_v9, %v337_v9  ;;  %v4599_v9 = vld [vmem:[#allocation5] sm:$0x3] }
  0xa5   : > { %474 = vadd.xlane.f32.xlu0 %v473_v28  ;;  %3599 = vmatpush1.bf16.msra.mxu1 %v3742_v61  ;;  %v443_v28 = vadd.f32 %v368_v17, %v367_v16  ;;  %v3769_v61 = vld [vmem:[#allocation7 + $0x2a0] ss:$24 sps:$4 sm:$0xff]   ;;  %v4608_v12 = vrot.slane %v4599_v9, %v894_v8 }
  0xa6   : > { %1774 = vmatprep.subr.bf16.mxu0 %v3743_v3  ;;  %3584 = vmatprep.subr.bf16.mxu1 %v3743_v3  ;;  %v494_v34 = vadd.f32 %v402_v24, %v401_v23 }
  0xa8   : > { %435 = vadd.xlane.f32.xlu1 %v434_v37  ;;  %1775 = vmatpush1.bf16.msra.mxu0 %v3745_v7  ;;  %v338_v37 = vld [vmem:[%s4522_s11 + $0x1e0] sm:$0xff] }
  0xa9   : > { %432 = vadd.xlane.f32.xlu0 %v431_v42  ;;  %3600 = vmatpush1.bf16.msra.mxu1 %v3745_v7  ;;  %v372_v42 = vmul.f32 %v307_v26, %v307_v26  ;;  %v403_v48 = vmul.f32 %v338_v37, %v338_v37 }
  0xaa   : > { %1776 = vmatprep.subr.bf16.mxu0 %v3746_v18  ;;  %3585 = vmatprep.subr.bf16.mxu1 %v3746_v18 }
  0xab   : > { %v449_v47 = vadd.f32 %v372_v42, %v371_v41  ;;  %v497_v53 = vadd.f32 %v404_v49, %v403_v48 }
  0xac   : > { %483 = vadd.xlane.f32.xlu1 %v482_v50  ;;  %1777 = vmatpush1.bf16.msra.mxu0 %v3748_v21  ;;  %v3755_v50 = vld [vmem:[#allocation7 + $0x1e4] ss:$24 sps:$4 sm:$0xff]  }
  0xad   : > { %480 = vadd.xlane.f32.xlu0 %v479_v55  ;;  %3601 = vmatpush1.bf16.msra.mxu1 %v3748_v21  ;;  %v3760_v55 = vld [vmem:[#allocation7 + $0x210] ss:$24 sps:$4 sm:$0xff]  }
  0xae   : > { %1778 = vmatprep.subr.bf16.mxu0 %v3749_v27  ;;  %3586 = vmatprep.subr.bf16.mxu1 %v3749_v27 }
  0xb0   : > { %441 = vadd.xlane.f32.xlu1 %v440_v62  ;;  %1779 = vmatpush1.bf16.msra.mxu0 %v3751_v33  ;;  %v3770_v62 = vld [vmem:[#allocation7 + $0x2d4] ss:$24 sps:$4 sm:$0xff]  }
  0xb1   : > { %438 = vadd.xlane.f32.xlu0 %v437_v4  ;;  %3602 = vmatpush1.bf16.msra.mxu1 %v3751_v33 }
  0xb2   : > { %1780 = vmatprep.subr.bf16.mxu0 %v3752_v39  ;;  %3587 = vmatprep.subr.bf16.mxu1 %v3752_v39 }
  0xb4   : > { %489 = vadd.xlane.f32.xlu1 %v488_v10  ;;  %1781 = vmatpush1.bf16.msra.mxu0 %v3754_v46 }
  0xb5   : > { %486 = vadd.xlane.f32.xlu0 %v485_v15  ;;  %3603 = vmatpush1.bf16.msra.mxu1 %v3754_v46 }
  0xb6   : > { %1782 = vmatprep.subr.bf16.mxu0 %v3755_v50  ;;  %3588 = vmatprep.subr.bf16.mxu1 %v3755_v50 }
  0xb8   : > { %447 = vadd.xlane.f32.xlu1 %v446_v22  ;;  %1783 = vmatpush1.bf16.msra.mxu0 %v3757_v52 }
  0xb9   : > { %444 = vadd.xlane.f32.xlu0 %v443_v28  ;;  %3604 = vmatpush1.bf16.msra.mxu1 %v3757_v52 }
  0xba   : > { %1784 = vmatprep.subr.bf16.mxu0 %v3758_v54  ;;  %3589 = vmatprep.subr.bf16.mxu1 %v3758_v54 }
  0xbc   : > { %495 = vadd.xlane.f32.xlu1 %v494_v34  ;;  %1785 = vmatpush1.bf16.msra.mxu0 %v3760_v55 }
  0xbd   : > { %492 = vadd.xlane.f32.xlu0 %v491_v40  ;;  %3605 = vmatpush1.bf16.msra.mxu1 %v3760_v55 }
  0xbe   : > { %1786 = vmatprep.subr.bf16.mxu0 %v3761_v56  ;;  %3590 = vmatprep.subr.bf16.mxu1 %v3761_v56 }
  0xc0   : > { %453 = vadd.xlane.f32.xlu1 %v452_v43  ;;  %1787 = vmatpush1.bf16.msra.mxu0 %v3763_v57 }
  0xc1   : > { %450 = vadd.xlane.f32.xlu0 %v449_v47  ;;  %3606 = vmatpush1.bf16.msra.mxu1 %v3763_v57 }
  0xc2   : > { %1788 = vmatprep.subr.bf16.mxu0 %v3764_v58  ;;  %3591 = vmatprep.subr.bf16.mxu1 %v3764_v58 }
  0xc4   : > { %501 = vadd.xlane.f32.xlu1 %v500_v51  ;;  %1789 = vmatpush1.bf16.msra.mxu0 %v3766_v59 }
  0xc5   : > { %498 = vadd.xlane.f32.xlu0 %v497_v53  ;;  %3607 = vmatpush1.bf16.msra.mxu1 %v3766_v59 }
  0xc6   : > { %1790 = vmatprep.subr.bf16.mxu0 %v3767_v60  ;;  %3592 = vmatprep.subr.bf16.mxu1 %v3767_v60 }
  0xc8   : > { %1791 = vmatpush1.bf16.msra.mxu0 %v3769_v61 }
  0xc9   : > { %3608 = vmatpush1.bf16.msra.mxu1 %v3769_v61  ;;  %1792 = vmatprep.subr.bf16.mxu0 %v3770_v62 }
  0xca   : > { %3593 = vmatprep.subr.bf16.mxu1 %v3770_v62 }
  0xcc   : > { %1793 = vmatpush1.bf16.msra.mxu0 %v3772_v63 }
  0xcd   : > { %3609 = vmatpush1.bf16.msra.mxu1 %v3772_v63  ;;  %2148 = vmatprep.subr.bf16.mxu0 %v3778_v1 }
  0xce   : > { %1955 = vmatprep.subr.bf16.mxu1 %v3775_v0 }
 0x115   : > { %v457_v3 = vpop.xlane.xlu1 %456 }
 0x116   : > { %3869 = vrsqrt.f32 %v457_v3  ;;  %v409_v4 = vpop.xlane.xlu0 %408  ;;  %vm617_vm0 = vcmp.eq.f32.partialorder %v457_v3, inf  ;;  %vm619_vm1 = vcmp.eq.f32.partialorder %v457_v3, 0.0  ;;  %v620_v15 = vand.u32 2147483648, %v457_v3 }
 0x117   : > { %3871 = vrsqrt.f32 %v409_v4  ;;  %vm505_vm2 = vcmp.eq.f32.partialorder %v409_v4, inf  ;;  %vm507_vm3 = vcmp.eq.f32.partialorder %v409_v4, 0.0  ;;  %v508_v18 = vand.u32 2147483648, %v409_v4 }
 0x119   : > { %v460_v6 = vpop.xlane.xlu1 %459 }
 0x11a   : > { %3873 = vrsqrt.f32 %v460_v6  ;;  %v412_v7 = vpop.xlane.xlu0 %411  ;;  %vm624_vm4 = vcmp.eq.f32.partialorder %v460_v6, inf  ;;  %vm626_vm5 = vcmp.eq.f32.partialorder %v460_v6, 0.0  ;;  %v627_v21 = vand.u32 2147483648, %v460_v6 }
 0x11b   : > { %3875 = vrsqrt.f32 %v412_v7  ;;  %vm512_vm6 = vcmp.eq.f32.partialorder %v412_v7, inf  ;;  %vm514_vm7 = vcmp.eq.f32.partialorder %v412_v7, 0.0  ;;  %v515_v24 = vand.u32 2147483648, %v412_v7 }
 0x11d   : > { %v4601_v10 = vpop.xlane.xlu1 %417 }
 0x11e   : > { %3877 = vrsqrt.f32 %v4601_v10  ;;  %v4604_v11 = vpop.xlane.xlu0 %414  ;;  %vm526_vm8 = vcmp.eq.f32.partialorder %v4601_v10, inf  ;;  %vm528_vm9 = vcmp.eq.f32.partialorder %v4601_v10, 0.0  ;;  %v529_v32 = vand.u32 2147483648, %v4601_v10 }
 0x11f   : > { %3879 = vrsqrt.f32 %v4604_v11  ;;  %vm519_vm10 = vcmp.eq.f32.partialorder %v4604_v11, inf  ;;  %vm521_vm11 = vcmp.eq.f32.partialorder %v4604_v11, 0.0  ;;  %v522_v38 = vand.u32 2147483648, %v4604_v11 }
 0x120   : > { %v3870_v14 = vpop.eup %3869 }
 0x121   : > { %v3872_v16 = vpop.eup %3871  ;;  %v616_v17 = vmul.f32 %v3870_v14, %v457_v3  ;;  %v4611_v19 = vpop.xlane.xlu1 %465 }
 0x122   : > { %v504_v20 = vmul.f32 %v3872_v16, %v409_v4  ;;  %3881 = vrsqrt.f32 %v4611_v19  ;;  %v4614_v22 = vpop.xlane.xlu0 %462  ;;  %vm638_vm12 = vcmp.eq.f32.partialorder %v4611_v19, inf  ;;  %vm640_vm13 = vcmp.eq.f32.partialorder %v4611_v19, 0.0 }
 0x123   : > { %v618_v23 = vsel %vm617_vm0, %v457_v3, %v616_v17  ;;  %3883 = vrsqrt.f32 %v4614_v22  ;;  %v641_v51 = vand.u32 2147483648, %v4611_v19  ;;  %vm631_vm14 = vcmp.eq.f32.partialorder %v4614_v22, inf }
 0x124   : > { %v3874_v25 = vpop.eup %3873  ;;  %v621_v26 = vsel %vm619_vm1, %v620_v15, %v618_v23  ;;  %v506_v27 = vsel %vm505_vm2, %v409_v4, %v504_v20  ;;  %vm633_vm15 = vcmp.eq.f32.partialorder %v4614_v22, 0.0  ;;  %v634_v58 = vand.u32 2147483648, %v4614_v22 }
 0x125   : > { %v3876_v28 = vpop.eup %3875  ;;  %v743_v29 = vmul.f32 0.0625, %v621_v26  ;;  %v509_v30 = vsel %vm507_vm3, %v508_v18, %v506_v27  ;;  %v623_v31 = vmul.f32 %v3874_v25, %v460_v6  ;;  %v4624_v33 = vpop.xlane.xlu1 %423 }
 0x126   : > { %v727_v34 = vmul.f32 0.0625, %v509_v30  ;;  %v511_v35 = vmul.f32 %v3876_v28, %v412_v7  ;;  %3885 = vrsqrt.f32 %v4624_v33  ;;  %v4628_v36 = vpop.xlane.xlu0 %420  ;;  %vm540_vm0 = vcmp.eq.f32.partialorder %v4624_v33, inf }
 0x127   : > { %v625_v37 = vsel %vm624_vm4, %v460_v6, %v623_v31  ;;  %3887 = vrsqrt.f32 %v4628_v36  ;;  %v775_v43 = vadd.f32 1e-08, %v743_v29  ;;  %vm542_vm1 = vcmp.eq.f32.partialorder %v4624_v33, 0.0 }
 0x128   : > { %v3878_v39 = vpop.eup %3877  ;;  %v628_v40 = vsel %vm626_vm5, %v627_v21, %v625_v37  ;;  %v513_v41 = vsel %vm512_vm6, %v412_v7, %v511_v35  ;;  %v759_v48 = vadd.f32 1e-08, %v727_v34  ;;  %v543_v20 = vand.u32 2147483648, %v4624_v33 }
 0x129   : > { %v3880_v42 = vpop.eup %3879  ;;  %v744_v44 = vmul.f32 0.0625, %v628_v40  ;;  %v516_v45 = vsel %vm514_vm7, %v515_v24, %v513_v41  ;;  %v525_v46 = vmul.f32 %v3878_v39, %v4601_v10  ;;  %v4640_v47 = vpop.xlane.xlu1 %471  ;;  %vm533_vm2 = vcmp.eq.f32.partialorder %v4628_v36, inf }
 0x12a   : > { %v728_v49 = vmul.f32 0.0625, %v516_v45  ;;  %v518_v50 = vmul.f32 %v3880_v42, %v4604_v11  ;;  %v4644_v52 = vpop.xlane.xlu0 %468  ;;  %3889 = vrsqrt.f32 %v4640_v47  ;;  %vm535_vm3 = vcmp.eq.f32.partialorder %v4628_v36, 0.0 }
 0x12b   : > { %v776_v53 = vadd.f32 1e-08, %v744_v44  ;;  %v527_v54 = vsel %vm526_vm8, %v4601_v10, %v525_v46  ;;  %3891 = vrcp.f32 %v775_v43  ;;  %v536_v26 = vand.u32 2147483648, %v4628_v36 }
 0x12c   : > { %v3882_v55 = vpop.eup %3881  ;;  %v530_v56 = vsel %vm528_vm9, %v529_v32, %v527_v54  ;;  %v520_v57 = vsel %vm519_vm10, %v4604_v11, %v518_v50  ;;  %3893 = vrcp.f32 %v759_v48  ;;  %v760_v0 = vadd.f32 1e-08, %v728_v49 }
 0x12d   : > { %v3884_v59 = vpop.eup %3883  ;;  %v730_v60 = vmul.f32 0.0625, %v530_v56  ;;  %v523_v61 = vsel %vm521_vm11, %v522_v38, %v520_v57  ;;  %v637_v62 = vmul.f32 %v3882_v55, %v4611_v19  ;;  %v4661_v63 = vpop.xlane.xlu1 %429  ;;  %3895 = vrcp.f32 %v776_v53 }
 0x12e   : > { %v729_v1 = vmul.f32 0.0625, %v523_v61  ;;  %v630_v2 = vmul.f32 %v3884_v59, %v4614_v22  ;;  %v4664_v3 = vpop.xlane.xlu0 %426  ;;  %3897 = vrsqrt.f32 %v4644_v52  ;;  %vm652_vm4 = vcmp.eq.f32.partialorder %v4640_v47, inf }
 0x12f   : > { %v762_v4 = vadd.f32 1e-08, %v730_v60  ;;  %v639_v6 = vsel %vm638_vm12, %v4611_v19, %v637_v62  ;;  %3899 = vrcp.f32 %v760_v0  ;;  %v4704_v34 = vrot.slane %v4599_v9, %v890_v13 }
 0x130   : > { %v3886_v7 = vpop.eup %3885  ;;  %v642_v8 = vsel %vm640_vm13, %v641_v51, %v639_v6  ;;  %v632_v10 = vsel %vm631_vm14, %v4614_v22, %v630_v2  ;;  %v761_v11 = vadd.f32 1e-08, %v729_v1  ;;  %vm654_vm5 = vcmp.eq.f32.partialorder %v4640_v47, 0.0 }
 0x131   : > { %v746_v14 = vmul.f32 0.0625, %v642_v8  ;;  %v635_v15 = vsel %vm633_vm15, %v634_v58, %v632_v10  ;;  %v539_v16 = vmul.f32 %v3886_v7, %v4624_v33  ;;  %v4680_v17 = vpop.xlane.xlu1 %477  ;;  %v3888_v18 = vpop.eup %3887  ;;  %3901 = vrcp.f32 %v762_v4 }
 0x132   : > { %v745_v19 = vmul.f32 0.0625, %v635_v15  ;;  %v4684_v21 = vpop.xlane.xlu0 %474  ;;  %v532_v24 = vmul.f32 %v3888_v18, %v4628_v36  ;;  %3903 = vrsqrt.f32 %v4661_v63  ;;  %v655_v40 = vand.u32 2147483648, %v4640_v47 }
 0x133   : > { %v778_v23 = vadd.f32 1e-08, %v746_v14  ;;  %v541_v22 = vsel %vm540_vm0, %v4624_v33, %v539_v16  ;;  %3905 = vrcp.f32 %v761_v11  ;;  %vm645_vm6 = vcmp.eq.f32.partialorder %v4644_v52, inf }
 0x134   : > { %v544_v25 = vsel %vm542_vm1, %v543_v20, %v541_v22  ;;  %v777_v27 = vadd.f32 1e-08, %v745_v19  ;;  %v534_v29 = vsel %vm533_vm2, %v4628_v36, %v532_v24  ;;  %v3890_v31 = vpop.eup %3889  ;;  %vm647_vm7 = vcmp.eq.f32.partialorder %v4644_v52, 0.0 }
 0x135   : > { %v732_v28 = vmul.f32 0.0625, %v544_v25  ;;  %v4696_v30 = vpop.xlane.xlu1 %435  ;;  %3907 = vrcp.f32 %v778_v23  ;;  %v537_v32 = vsel %vm535_vm3, %v536_v26, %v534_v29  ;;  %v4706_v35 = vpop.eup %3891  ;;  %v651_v36 = vmul.f32 %v3890_v31, %v4640_v47 }
 0x136   : > { %v4699_v33 = vpop.xlane.xlu0 %432  ;;  %v731_v38 = vmul.f32 0.0625, %v537_v32  ;;  %3909 = vrsqrt.f32 %v4664_v3  ;;  %v4710_v39 = vpop.eup %3893  ;;  %v648_v13 = vand.u32 2147483648, %v4644_v52  ;;  %vm554_vm8 = vcmp.eq.f32.partialorder %v4661_v63, inf }
 0x137   : > { %v764_v37 = vadd.f32 1e-08, %v732_v28  ;;  %3911 = vrsqrt.f32 %v4680_v17  ;;  %v4716_v5 = vpop.eup %3895  ;;  %v653_v9 = vsel %vm652_vm4, %v4640_v47, %v651_v36  ;;  %vm556_vm9 = vcmp.eq.f32.partialorder %v4661_v63, 0.0 }
 0x138   : > { %3913 = vrcp.f32 %v777_v27  ;;  %v3898_v42 = vpop.eup %3897  ;;  %v656_v43 = vsel %vm654_vm5, %v655_v40, %v653_v9  ;;  %v763_v44 = vadd.f32 1e-08, %v731_v38  ;;  %v557_v49 = vand.u32 2147483648, %v4661_v63 }
 0x139   : > { %v4721_v41 = vpop.xlane.xlu1 %483  ;;  %3915 = vrsqrt.f32 %v4684_v21  ;;  %v748_v45 = vmul.f32 0.0625, %v656_v43  ;;  %v644_v46 = vmul.f32 %v3898_v42, %v4644_v52  ;;  %v4729_v48 = vpop.eup %3899  ;;  %vm547_vm10 = vcmp.eq.f32.partialorder %v4664_v3, inf }
 0x13a   : > { %3917 = vrcp.f32 %v764_v37  ;;  %v4727_v47 = vpop.xlane.xlu0 %480  ;;  %vm549_vm11 = vcmp.eq.f32.partialorder %v4664_v3, 0.0  ;;  %v550_v53 = vand.u32 2147483648, %v4664_v3  ;;  %vm666_vm12 = vcmp.eq.f32.partialorder %v4680_v17, inf }
 0x13b   : > { %3919 = vrsqrt.f32 %v4696_v30  ;;  %v4735_v50 = vpop.eup %3901  ;;  %v646_v51 = vsel %vm645_vm6, %v4644_v52, %v644_v46  ;;  %vm668_vm13 = vcmp.eq.f32.partialorder %v4680_v17, 0.0  ;;  %v669_v56 = vand.u32 2147483648, %v4680_v17 }
 0x13c   : > { %3921 = vrsqrt.f32 %v4699_v33  ;;  %v3904_v54 = vpop.eup %3903  ;;  %v649_v55 = vsel %vm647_vm7, %v648_v13, %v646_v51  ;;  %vm659_vm14 = vcmp.eq.f32.partialorder %v4684_v21, inf  ;;  %v780_v58 = vadd.f32 1e-08, %v748_v45 }
 0x13d   : > { %v4748_v57 = vpop.eup %3905  ;;  %3923 = vrcp.f32 %v763_v44  ;;  %v747_v59 = vmul.f32 0.0625, %v649_v55  ;;  %v553_v60 = vmul.f32 %v3904_v54, %v4661_v63  ;;  %v4751_v61 = vpop.xlane.xlu1 %441  ;;  %vm661_vm15 = vcmp.eq.f32.partialorder %v4684_v21, 0.0  ;;  %v3997_v44 = vld [vmem:[%s4522_s11 + $0x8] sm:$0xff] }
 0x13e   : > { %v662_v52 = vand.u32 2147483648, %v4684_v21  ;;  %vm568_vm0 = vcmp.eq.f32.partialorder %v4696_v30, inf  ;;  %3925 = vrsqrt.f32 %v4721_v41  ;;  %vm570_vm1 = vcmp.eq.f32.partialorder %v4696_v30, 0.0  ;;  %v4766_v4 = vpop.xlane.xlu0 %438 }
 0x13f   : > { %v4753_v62 = vpop.eup %3907  ;;  %v555_v1 = vsel %vm554_vm8, %v4661_v63, %v553_v60  ;;  %v571_v2 = vand.u32 2147483648, %v4696_v30  ;;  %vm561_vm2 = vcmp.eq.f32.partialorder %v4699_v33, inf  ;;  %3927 = vrsqrt.f32 %v4727_v47 }
 0x140   : > { %v3910_v0 = vpop.eup %3909  ;;  %v779_v7 = vadd.f32 1e-08, %v747_v59  ;;  %v558_v8 = vsel %vm556_vm9, %v557_v49, %v555_v1  ;;  %vm563_vm3 = vcmp.eq.f32.partialorder %v4699_v33, 0.0  ;;  %3929 = vrsqrt.f32 %v4751_v61 }
 0x141   : > { %v3912_v6 = vpop.eup %3911  ;;  %v546_v10 = vmul.f32 %v3910_v0, %v4664_v3  ;;  %3931 = vrcp.f32 %v780_v58  ;;  %v734_v14 = vmul.f32 0.0625, %v558_v8  ;;  %v564_v16 = vand.u32 2147483648, %v4699_v33 }
 0x142   : > { %v4773_v11 = vpop.eup %3913  ;;  %v665_v15 = vmul.f32 %v3912_v6, %v4680_v17  ;;  %v683_v19 = vand.u32 2147483648, %v4721_v41  ;;  %v676_v20 = vand.u32 2147483648, %v4727_v47  ;;  %3933 = vrsqrt.f32 %v4766_v4 }
 0x143   : > { %v3916_v18 = vpop.eup %3915  ;;  %v548_v63 = vsel %vm547_vm10, %v4664_v3, %v546_v10  ;;  %v766_v22 = vadd.f32 1e-08, %v734_v14  ;;  %vm680_vm4 = vcmp.eq.f32.partialorder %v4721_v41, inf  ;;  %vm673_vm5 = vcmp.eq.f32.partialorder %v4727_v47, inf }
 0x144   : > { %v4783_v23 = vpop.eup %3917  ;;  %v551_v24 = vsel %vm549_vm11, %v550_v53, %v548_v63  ;;  %v667_v25 = vsel %vm666_vm12, %v4680_v17, %v665_v15  ;;  %v658_v26 = vmul.f32 %v3916_v18, %v4684_v21  ;;  %3935 = vrcp.f32 %v779_v7  ;;  %v3998_v53 = vld [vmem:[%s4522_s11 + $0x18] sm:$0xff] }
 0x145   : > { %v3920_v27 = vpop.eup %3919  ;;  %v733_v28 = vmul.f32 0.0625, %v551_v24  ;;  %v670_v29 = vsel %vm668_vm13, %v669_v56, %v667_v25  ;;  %vm682_vm6 = vcmp.eq.f32.partialorder %v4721_v41, 0.0  ;;  %vm675_vm7 = vcmp.eq.f32.partialorder %v4727_v47, 0.0  ;;  %v4852_v25 = vpop.xlane.xlu1 %489 }
 0x146   : > { %vm582_vm8 = vcmp.eq.f32.partialorder %v4751_v61, inf  ;;  %v3922_v3 = vpop.eup %3921  ;;  %v750_v31 = vmul.f32 0.0625, %v670_v29  ;;  %v660_v32 = vsel %vm659_vm14, %v4684_v21, %v658_v26  ;;  %v567_v37 = vmul.f32 %v3920_v27, %v4696_v30  ;;  %v4000_v29 = vld [vmem:[%s4522_s11 + $0x118] sm:$0xff] }
 0x147   : > { %vm584_vm9 = vcmp.eq.f32.partialorder %v4751_v61, 0.0  ;;  %v585_v17 = vand.u32 2147483648, %v4751_v61  ;;  %3937 = vrcp.f32 %v766_v22  ;;  %v765_v38 = vadd.f32 1e-08, %v733_v28  ;;  %v4807_v9 = vpop.eup %3923  ;;  %v3999_v22 = vld [vmem:[%s4522_s11 + $0x108] sm:$0xff] }
 0x148   : > { %v663_v36 = vsel %vm661_vm15, %v662_v52, %v660_v32  ;;  %v560_v40 = vmul.f32 %v3922_v3, %v4699_v33  ;;  %v782_v13 = vadd.f32 1e-08, %v750_v31  ;;  %v569_v43 = vsel %vm568_vm0, %v4696_v30, %v567_v37  ;;  %v3926_v46 = vpop.eup %3925 }
 0x149   : > { %v749_v42 = vmul.f32 0.0625, %v663_v36  ;;  %v824_v45 = vmul.f32 %v3997_v44, %v4710_v39  ;;  %v572_v49 = vsel %vm570_vm1, %v571_v2, %v569_v43  ;;  %vm575_vm10 = vcmp.eq.f32.partialorder %v4766_v4, inf  ;;  %v3928_v55 = vpop.eup %3927  ;;  %v4878_v43 = vpop.xlane.xlu0 %486 }
 0x14a   : > { %v562_v21 = vsel %vm561_vm2, %v4699_v33, %v560_v40  ;;  %v578_v51 = vand.u32 2147483648, %v4766_v4  ;;  %v826_v54 = vmul.f32 %v3998_v53, %v4729_v48  ;;  %3939 = vrcp.f32 %v765_v38  ;;  %v3930_v30 = vpop.eup %3929 }
 0x14b   : > { %v781_v56 = vadd.f32 1e-08, %v749_v42  ;;  %v736_v58 = vmul.f32 0.0625, %v572_v49  ;;  %v565_v59 = vsel %vm563_vm3, %v564_v16, %v562_v21  ;;  %vm577_vm11 = vcmp.eq.f32.partialorder %v4766_v4, 0.0  ;;  %v4828_v1 = vpop.eup %3931 }
 0x14c   : > { %3941 = vrcp.f32 %v782_v13  ;;  %v735_v60 = vmul.f32 0.0625, %v565_v59  ;;  %v679_v52 = vmul.f32 %v3926_v46, %v4721_v41  ;;  %v672_v0 = vmul.f32 %v3928_v55, %v4727_v47  ;;  %v3934_v8 = vpop.eup %3933  ;;  %v4002_v13 = vld [vmem:[%s4522_s11 + $0x10] sm:$0xff]  ;;  %v4003_v46 = vld [vmem:[%s4522_s11 + $0x100] sm:$0xff]  ;;  %v4890_v55 = vpop.xlane.xlu1 %447 }
 0x14d   : > { %v768_v2 = vadd.f32 1e-08, %v736_v58  ;;  %v581_v6 = vmul.f32 %v3930_v30, %v4751_v61  ;;  %v4832_v7 = vmul.f32 %v4608_v12, %v824_v45  ;;  %v4835_v33 = vmul.f32 %v4608_v12, %v826_v54  ;;  %v4004_v58 = vld [vmem:[%s4522_s11 + $0x110] sm:$0xff] }
 0x14e   : > { %3943 = vrcp.f32 %v781_v56  ;;  %v767_v10 = vadd.f32 1e-08, %v735_v60  ;;  %v681_v14 = vsel %vm680_vm4, %v4721_v41, %v679_v52  ;;  %v674_v15 = vsel %vm673_vm5, %v4727_v47, %v672_v0  ;;  %v4854_v26 = vpop.eup %3935  ;;  %v3784_v0 = vld [vmem:[#allocation7 + $0x44] ss:$24 sps:$4 sm:$0xff]  }
 0x14f   : > { %v684_v16 = vsel %vm682_vm6, %v683_v19, %v681_v14  ;;  %v677_v18 = vsel %vm675_vm7, %v676_v20, %v674_v15  ;;  %v583_v63 = vsel %vm582_vm8, %v4751_v61, %v581_v6  ;;  %v856_v24 = vmul.f32 %v3999_v22, %v4706_v35  ;;  %v4001_v61 = vld [vmem:[%s4522_s11] sm:$0xff]  ;;  %v4006_v22 = vld [vmem:[%s4522_s11 + $0x38] sm:$0xff] }
 0x150   : > { %3945 = vrcp.f32 %v768_v2  ;;  %v752_v27 = vmul.f32 0.0625, %v684_v16  ;;  %v751_v41 = vmul.f32 0.0625, %v677_v18  ;;  %v586_v47 = vsel %vm584_vm9, %v585_v17, %v583_v63  ;;  %v3781_v15 = vld [vmem:[#allocation7 + $0x3c] ss:$24 sps:$4 sm:$0xff]   ;;  %v3782_v16 = vld [vmem:[#allocation7 + $0x40] ss:$24 sps:$4 sm:$0xff]  }
 0x151   : > { %v738_v19 = vmul.f32 0.0625, %v586_v47  ;;  %v574_v20 = vmul.f32 %v3934_v8, %v4766_v4  ;;  %v4861_v28 = vpack.c.bf16 %v4835_v33, %v4832_v7  ;;  %v858_v3 = vmul.f32 %v4000_v29, %v4716_v5  ;;  %v4865_v31 = vpop.eup %3937  ;;  %v4005_v18 = vld [vmem:[%s4522_s11 + $0x28] sm:$0xff] }
 0x152   : > { %3947 = vrcp.f32 %v767_v10  ;;  %v784_v32 = vadd.f32 1e-08, %v752_v27  ;;  %v783_v37 = vadd.f32 1e-08, %v751_v41  ;;  %v823_v17 = vmul.f32 %v4001_v61, %v4710_v39  ;;  %v3790_v27 = vld [vmem:[#allocation7 + $0x74] ss:$24 sps:$4 sm:$0xff]   ;;  %v4926_v41 = vpop.xlane.xlu1 %495 }
 0x153   : > { %v576_v38 = vsel %vm575_vm10, %v4766_v4, %v574_v20  ;;  %1794 = vmatprep.mubr.bf16.mxu0 %v4861_v28  ;;  %v931_v36 = vmul.f32 %v4608_v12, %v856_v24  ;;  %v933_v40 = vmul.f32 %v4608_v12, %v858_v3  ;;  %v825_v42 = vmul.f32 %v4002_v13, %v4729_v48  ;;  %v3776_v4 = vld [vmem:[#allocation7 + $0x10] ss:$24 sps:$4 sm:$0xff]   ;;  %v4009_v13 = vld [vmem:[%s4522_s11 + $0x20] sm:$0xff] }
 0x154   : > { %v770_v44 = vadd.f32 1e-08, %v738_v19  ;;  %v579_v39 = vsel %vm577_vm11, %v578_v51, %v576_v38  ;;  %v898_v45 = vmul.f32 %v4704_v34, %v823_v17  ;;  %v855_v49 = vmul.f32 %v4003_v46, %v4706_v35  ;;  %v4885_v21 = vpop.eup %3939  ;;  %v4008_v17 = vld [vmem:[%s4522_s11 + $0x138] sm:$0xff] }
 0x155   : > { %3949 = vrcp.f32 %v784_v32  ;;  %v737_v53 = vmul.f32 0.0625, %v579_v39  ;;  %v4887_v54 = vpack.c.bf16 %v933_v40, %v931_v36  ;;  %v900_v48 = vmul.f32 %v4704_v34, %v825_v42  ;;  %v3779_v32 = vld [vmem:[#allocation7 + $0x38] ss:$24 sps:$4 sm:$0xff]  }
 0x156   : > { %v4892_v56 = vpop.eup %3941  ;;  %3951 = vrcp.f32 %v783_v37  ;;  %v3449_v51 = vpack.c.bf16 %v4832_v7, %v898_v45  ;;  %v857_v35 = vmul.f32 %v4004_v58, %v4716_v5  ;;  %v930_v59 = vmul.f32 %v4704_v34, %v855_v49  ;;  %v3773_v7 = vld [vmem:[#allocation7 + $0x8] ss:$24 sps:$4 sm:$0xff]  }
 0x157   : > { %v769_v30 = vadd.f32 1e-08, %v737_v53  ;;  %1874 = vmatprep.mubr.bf16.mxu1 %v4887_v54  ;;  %v4899_v60 = vpack.c.bf16 %v900_v48, %v898_v45  ;;  %v3450_v52 = vpack.c.bf16 %v4835_v33, %v900_v48  ;;  %3953 = vrsqrt.f32 %v4852_v25  ;;  %v4913_v33 = vpop.xlane.xlu0 %444  ;;  %v4007_v37 = vld [vmem:[%s4522_s11 + $0x128] sm:$0xff]  ;;  %v4010_v45 = vld [vmem:[%s4522_s11 + $0x30] sm:$0xff]  ;;  %v4011_v49 = vld [vmem:[%s4522_s11 + $0x120] sm:$0xff] }
 0x158   : > { %v4903_v2 = vpop.eup %3943  ;;  %3955 = vrcp.f32 %v770_v44  ;;  %1154 = vst [vmem:[%s4907_s26] sm:$0xff] %v3449_v51  ;;  %v932_v5 = vmul.f32 %v4704_v34, %v857_v35  ;;  %v3465_v6 = vpack.c.bf16 %v931_v36, %v930_v59  ;;  %v828_v63 = vmul.f32 %v4005_v18, %v4748_v57  ;;  %v3787_v36 = vld [vmem:[#allocation7 + $0x6c] ss:$24 sps:$4 sm:$0xff]  }
 0x159   : > { %3957 = vrcp.f32 %v769_v30  ;;  %1155 = vst [vmem:[%s4907_s26 + $0x8] sm:$0xff] %v3450_v52  ;;  %1795 = vmatmul.mubr.bf16.vlgmr.msra.gmra.mrb[0].mxu0 %v4899_v60  ;;  %v830_v24 = vmul.f32 %v4006_v22, %v4735_v50  ;;  %vm694_vm12 = vcmp.eq.f32.partialorder %v4852_v25, inf  ;;  %vm696_vm13 = vcmp.eq.f32.partialorder %v4852_v25, 0.0  ;;  %v4012_v48 = vld [vmem:[%s4522_s11 + $0x130] sm:$0xff] }
 0x15a   : > { %v4915_v8 = vpop.eup %3945  ;;  %v4917_v10 = vpack.c.bf16 %v932_v5, %v930_v59  ;;  %v3466_v14 = vpack.c.bf16 %v933_v40, %v932_v5  ;;  %1170 = vst [vmem:[%s4907_s26 + $0x80] sm:$0xff] %v3465_v6  ;;  %2149 = vmatpush1.bf16.msra.mxu0 %v3776_v4  ;;  %3959 = vrsqrt.f32 %v4878_v43  ;;  %v697_v19 = vand.u32 2147483648, %v4852_v25  ;;  %v3788_v40 = vld [vmem:[#allocation7 + $0x70] ss:$24 sps:$4 sm:$0xff]   ;;  %v3796_v4 = vld [vmem:[#allocation7 + $0xa4] ss:$24 sps:$4 sm:$0xff]  }
 0x15b   : > { %2150 = vmatprep.subr.bf16.mxu0 %v3784_v0  ;;  %3961 = vrsqrt.f32 %v4890_v55  ;;  %v690_v20 = vand.u32 2147483648, %v4878_v43  ;;  %v903_v29 = vmul.f32 %v4608_v12, %v828_v63  ;;  %v4939_v3 = vmul.f32 %v4608_v12, %v830_v24  ;;  %v4974_v0 = vpop.xlane.xlu0 %492 }
 0x15c   : > { %v4928_v47 = vpop.eup %3947  ;;  %1171 = vst [vmem:[%s4907_s26 + $0x88] sm:$0xff] %v3466_v14  ;;  %1875 = vmatmul.mubr.bf16.vlgmr.msra.gmra.mrb[0].mxu1 %v4917_v10  ;;  %3963 = vrsqrt.f32 %v4913_v33  ;;  %vm687_vm14 = vcmp.eq.f32.partialorder %v4878_v43, inf  ;;  %v860_v61 = vmul.f32 %v4007_v37, %v4773_v11  ;;  %v862_v38 = vmul.f32 %v4008_v17, %v4753_v62  ;;  %v3785_v14 = vld [vmem:[#allocation7 + $0x68] ss:$24 sps:$4 sm:$0xff]   ;;  %v3802_v37 = vld [vmem:[#allocation7 + $0xd4] ss:$24 sps:$4 sm:$0xff]  }
 0x15d   : > { %1956 = vmatpush1.bf16.msra.mxu1 %v3773_v7  ;;  %v827_v42 = vmul.f32 %v4009_v13, %v4748_v57  ;;  %3965 = vrsqrt.f32 %v4926_v41  ;;  %vm689_vm15 = vcmp.eq.f32.partialorder %v4878_v43, 0.0  ;;  %v4953_v39 = vpack.c.bf16 %v4939_v3, %v903_v29 }
 0x15e   : > { %1957 = vmatprep.subr.bf16.mxu1 %v3781_v15  ;;  %2151 = vmatpush1.bf16.msra.mxu0 %v3782_v16  ;;  %vm596_vm0 = vcmp.eq.f32.partialorder %v4890_v55, inf  ;;  %v829_v46 = vmul.f32 %v4010_v45, %v4735_v50  ;;  %v859_v53 = vmul.f32 %v4011_v49, %v4773_v11  ;;  %v861_v57 = vmul.f32 %v4012_v48, %v4753_v62  ;;  %v3794_v16 = vld [vmem:[#allocation7 + $0xa0] ss:$24 sps:$4 sm:$0xff]  }
 0x15f   : > { %v4949_v44 = vpop.eup %3949  ;;  %2152 = vmatprep.subr.bf16.mxu0 %v3790_v27  ;;  %vm598_vm1 = vcmp.eq.f32.partialorder %v4890_v55, 0.0  ;;  %v599_v58 = vand.u32 2147483648, %v4890_v55  ;;  %v935_v35 = vmul.f32 %v4608_v12, %v860_v61  ;;  %v937_v59 = vmul.f32 %v4608_v12, %v862_v38  ;;  %1804 = vmatprep.mubr.bf16.mxu0 %v4953_v39  ;;  %v4996_v38 = vpop.xlane.xlu1 %453  ;;  %v4014_v49 = vld [vmem:[%s4522_s11 + $0x58] sm:$0xff] }
 0x160   : > { %v4962_v51 = vpop.eup %3951  ;;  %v902_v30 = vmul.f32 %v4704_v34, %v827_v42  ;;  %vm589_vm2 = vcmp.eq.f32.partialorder %v4913_v33, inf  ;;  %v904_v62 = vmul.f32 %v4704_v34, %v829_v46  ;;  %v934_v11 = vmul.f32 %v4704_v34, %v859_v53  ;;  %v3791_v48 = vld [vmem:[#allocation7 + $0x98] ss:$24 sps:$4 sm:$0xff]  }
 0x161   : > { %v3954_v50 = vpop.eup %3953  ;;  %1958 = vmatpush1.bf16.msra.mxu1 %v3779_v32  ;;  %v936_v52 = vmul.f32 %v4704_v34, %v861_v57  ;;  %vm591_vm3 = vcmp.eq.f32.partialorder %v4913_v33, 0.0  ;;  %v4980_v7 = vpack.c.bf16 %v937_v59, %v935_v35  ;;  %v3793_v32 = vld [vmem:[#allocation7 + $0x9c] ss:$24 sps:$4 sm:$0xff]   ;;  %v592_v17 = vand.u32 2147483648, %v4913_v33  ;;  %v3800_v57 = vld [vmem:[#allocation7 + $0xd0] ss:$24 sps:$4 sm:$0xff]  }
 0x162   : > { %v4976_v5 = vpop.eup %3955  ;;  %v693_v6 = vmul.f32 %v3954_v50, %v4852_v25  ;;  %1959 = vmatprep.subr.bf16.mxu1 %v3787_v36  ;;  %v3451_v15 = vpack.c.bf16 %v903_v29, %v902_v30  ;;  %2153 = vmatpush1.bf16.msra.mxu0 %v3788_v40  ;;  %v4984_v63 = vpack.c.bf16 %v904_v62, %v902_v30  ;;  %3967 = vrsqrt.f32 %v4974_v0  ;;  %v3799_v30 = vld [vmem:[#allocation7 + $0xcc] ss:$24 sps:$4 sm:$0xff]  }
 0x163   : > { %v4982_v18 = vpop.eup %3957  ;;  %v3452_v22 = vpack.c.bf16 %v4939_v3, %v904_v62  ;;  %v4987_v24 = vpack.c.bf16 %v936_v52, %v934_v11  ;;  %v3467_v27 = vpack.c.bf16 %v935_v35, %v934_v11  ;;  %2154 = vmatprep.subr.bf16.mxu0 %v3796_v4  ;;  %1884 = vmatprep.mubr.bf16.mxu1 %v4980_v7  ;;  %vm708_vm4 = vcmp.eq.f32.partialorder %v4926_v41, inf  ;;  %v3808_v50 = vld [vmem:[#allocation7 + $0x104] ss:$24 sps:$4 sm:$0xff]  }
 0x164   : > { %v3960_v61 = vpop.eup %3959  ;;  %v695_v29 = vsel %vm694_vm12, %v4852_v25, %v693_v6  ;;  %1156 = vst [vmem:[%s4907_s26 + $0x10] sm:$0xff] %v3451_v15  ;;  %v3468_v3 = vpack.c.bf16 %v937_v59, %v936_v52  ;;  %1805 = vmatmul.mubr.bf16.gmra.mrb[4].mxu0 %v4984_v63  ;;  %vm710_vm5 = vcmp.eq.f32.partialorder %v4926_v41, 0.0  ;;  %v4013_v25 = vld [vmem:[%s4522_s11 + $0x48] sm:$0xff]  ;;  %v834_v53 = vmul.f32 %v4014_v49, %v4783_v23 }
 0x165   : > { %v3962_v36 = vpop.eup %3961  ;;  %v698_v40 = vsel %vm696_vm13, %v697_v19, %v695_v29  ;;  %v686_v13 = vmul.f32 %v3960_v61, %v4878_v43  ;;  %1157 = vst [vmem:[%s4907_s26 + $0x18] sm:$0xff] %v3452_v22  ;;  %1172 = vst [vmem:[%s4907_s26 + $0x90] sm:$0xff] %v3467_v27  ;;  %1885 = vmatmul.mubr.bf16.gmra.mrb[4].mxu1 %v4987_v24  ;;  %v832_v19 = vmul.f32 %v4013_v25, %v4807_v9 }
 0x166   : > { %v3964_v42 = vpop.eup %3963  ;;  %v754_v45 = vmul.f32 0.0625, %v698_v40  ;;  %v595_v46 = vmul.f32 %v3962_v36, %v4890_v55  ;;  %1173 = vst [vmem:[%s4907_s26 + $0x98] sm:$0xff] %v3468_v3  ;;  %1960 = vmatpush1.bf16.msra.mxu1 %v3785_v14  ;;  %2155 = vmatpush1.bf16.msra.mxu0 %v3794_v16  ;;  %v711_v59 = vand.u32 2147483648, %v4926_v41  ;;  %3969 = vrsqrt.f32 %v4996_v38 }
 0x167   : > { %v688_v4 = vsel %vm687_vm14, %v4878_v43, %v686_v13  ;;  %v588_v35 = vmul.f32 %v3964_v42, %v4913_v33  ;;  %1961 = vmatprep.subr.bf16.mxu1 %v3793_v32  ;;  %2156 = vmatprep.subr.bf16.mxu0 %v3802_v37  ;;  %v3966_v62 = vpop.eup %3965  ;;  %vm701_vm6 = vcmp.eq.f32.partialorder %v4974_v0, inf  ;;  %v5030_v14 = vmul.f32 %v4608_v12, %v832_v19  ;;  %v3797_v37 = vld [vmem:[#allocation7 + $0xc8] ss:$24 sps:$4 sm:$0xff]   ;;  %v3814_v13 = vld [vmem:[#allocation7 + $0x134] ss:$24 sps:$4 sm:$0xff]  }
 0x168   : > { %v786_v11 = vadd.f32 1e-08, %v754_v45  ;;  %v691_v52 = vsel %vm689_vm15, %v690_v20, %v688_v4  ;;  %v597_v6 = vsel %vm596_vm0, %v4890_v55, %v595_v46  ;;  %v707_v20 = vmul.f32 %v3966_v62, %v4926_v41  ;;  %v3805_v55 = vld [vmem:[#allocation7 + $0xfc] ss:$24 sps:$4 sm:$0xff]   ;;  %v5057_v46 = vpop.xlane.xlu0 %450  ;;  %v4015_v19 = vld [vmem:[%s4522_s11 + $0x148] sm:$0xff] }
 0x169   : > { %v753_v15 = vmul.f32 0.0625, %v691_v52  ;;  %v600_v16 = vsel %vm598_vm1, %v599_v58, %v597_v6  ;;  %v590_v43 = vsel %vm589_vm2, %v4913_v33, %v588_v35  ;;  %vm703_vm7 = vcmp.eq.f32.partialorder %v4974_v0, 0.0  ;;  %v3806_v33 = vld [vmem:[#allocation7 + $0x100] ss:$24 sps:$4 sm:$0xff]   ;;  %v4018_v52 = vld [vmem:[%s4522_s11 + $0x50] sm:$0xff] }
 0x16a   : > { %v740_v22 = vmul.f32 0.0625, %v600_v16  ;;  %v593_v27 = vsel %vm591_vm3, %v592_v17, %v590_v43  ;;  %v5044_v32 = vmul.f32 %v4608_v12, %v834_v53  ;;  %1962 = vmatpush1.bf16.msra.mxu1 %v3791_v48  ;;  %2157 = vmatpush1.bf16.msra.mxu0 %v3800_v57  ;;  %v709_v29 = vsel %vm708_vm4, %v4926_v41, %v707_v20  ;;  %v3803_v53 = vld [vmem:[#allocation7 + $0xf8] ss:$24 sps:$4 sm:$0xff]   ;;  %v4017_v62 = vld [vmem:[%s4522_s11 + $0x40] sm:$0xff] }
 0x16b   : > { %v785_v58 = vadd.f32 1e-08, %v753_v15  ;;  %v739_v61 = vmul.f32 0.0625, %v593_v27  ;;  %v704_v3 = vand.u32 2147483648, %v4974_v0  ;;  %1963 = vmatprep.subr.bf16.mxu1 %v3799_v30  ;;  %2158 = vmatprep.subr.bf16.mxu0 %v3808_v50  ;;  %3971 = vrcp.f32 %v786_v11  ;;  %v4016_v4 = vld [vmem:[%s4522_s11 + $0x158] sm:$0xff] }
 0x16c   : > { %v772_v17 = vadd.f32 1e-08, %v740_v22  ;;  %v712_v36 = vsel %vm710_vm5, %v711_v59, %v709_v29  ;;  %v5054_v40 = vpack.c.bf16 %v5044_v32, %v5030_v14  ;;  %vm610_vm8 = vcmp.eq.f32.partialorder %v4996_v38, inf  ;;  %v3968_v25 = vpop.eup %3967  ;;  %v3811_v59 = vld [vmem:[#allocation7 + $0x12c] ss:$24 sps:$4 sm:$0xff]  }
 0x16d   : > { %3973 = vrcp.f32 %v785_v58  ;;  %v771_v42 = vadd.f32 1e-08, %v739_v61  ;;  %v756_v45 = vmul.f32 0.0625, %v712_v36  ;;  %vm612_vm9 = vcmp.eq.f32.partialorder %v4996_v38, 0.0  ;;  %v3812_v30 = vld [vmem:[#allocation7 + $0x130] ss:$24 sps:$4 sm:$0xff]  }
 0x16e   : > { %3975 = vrcp.f32 %v772_v17  ;;  %1814 = vmatprep.mubr.bf16.mxu0 %v5054_v40  ;;  %v613_v41 = vand.u32 2147483648, %v4996_v38  ;;  %v864_v49 = vmul.f32 %v4015_v19, %v4854_v26  ;;  %1964 = vmatpush1.bf16.msra.mxu1 %v3797_v37  ;;  %v700_v57 = vmul.f32 %v3968_v25, %v4974_v0  ;;  %v3820_v15 = vld [vmem:[#allocation7 + $0x164] ss:$24 sps:$4 sm:$0xff]   ;;  %v3809_v58 = vld [vmem:[#allocation7 + $0x128] ss:$24 sps:$4 sm:$0xff]  }
 0x16f   : > { %3977 = vrcp.f32 %v771_v42  ;;  %v788_v48 = vadd.f32 1e-08, %v756_v45  ;;  %v866_v35 = vmul.f32 %v4016_v4, %v4828_v1  ;;  %1965 = vmatprep.subr.bf16.mxu1 %v3805_v55  ;;  %2159 = vmatpush1.bf16.msra.mxu0 %v3806_v33  ;;  %v831_v11 = vmul.f32 %v4017_v62, %v4807_v9  ;;  %v4019_v22 = vld [vmem:[%s4522_s11 + $0x140] sm:$0xff]  ;;  %v4020_v33 = vld [vmem:[%s4522_s11 + $0x150] sm:$0xff] }
 0x170   : > { %3979 = vrsqrt.f32 %v5057_v46  ;;  %v939_v50 = vmul.f32 %v4608_v12, %v864_v49  ;;  %v833_v6 = vmul.f32 %v4018_v52, %v4783_v23  ;;  %2160 = vmatprep.subr.bf16.mxu0 %v3814_v13  ;;  %v3970_v16 = vpop.eup %3969  ;;  %v702_v43 = vsel %vm701_vm6, %v4974_v0, %v700_v57  ;;  %v3817_v0 = vld [vmem:[#allocation7 + $0x15c] ss:$24 sps:$4 sm:$0xff]   ;;  %v5102_v57 = vpop.xlane.xlu0 %498 }
 0x171   : > { %3981 = vrcp.f32 %v788_v48  ;;  %v941_v20 = vmul.f32 %v4608_v12, %v866_v35  ;;  %v863_v27 = vmul.f32 %v4019_v22, %v4854_v26  ;;  %v705_v9 = vsel %vm703_vm7, %v704_v3, %v702_v43  ;;  %v5089_v26 = vpop.xlane.xlu1 %501  ;;  %v3818_v3 = vld [vmem:[#allocation7 + $0x160] ss:$24 sps:$4 sm:$0xff]   ;;  %v3826_v25 = vld [vmem:[#allocation7 + $0x194] ss:$24 sps:$4 sm:$0xff]  }
 0x172   : > { %v609_v37 = vmul.f32 %v3970_v16, %v4996_v38  ;;  %v906_v23 = vmul.f32 %v4704_v34, %v831_v11  ;;  %v908_v55 = vmul.f32 %v4704_v34, %v833_v6  ;;  %1966 = vmatpush1.bf16.msra.mxu1 %v3803_v53  ;;  %v755_v61 = vmul.f32 0.0625, %v705_v9  ;;  %v3824_v11 = vld [vmem:[#allocation7 + $0x190] ss:$24 sps:$4 sm:$0xff]   ;;  %v4022_v43 = vld [vmem:[%s4522_s11 + $0x78] sm:$0xff] }
 0x173   : > { %v5084_v29 = vpack.c.bf16 %v941_v20, %v939_v50  ;;  %v865_v17 = vmul.f32 %v4020_v33, %v4828_v1  ;;  %v938_v36 = vmul.f32 %v4704_v34, %v863_v27  ;;  %1967 = vmatprep.subr.bf16.mxu1 %v3811_v59  ;;  %2161 = vmatpush1.bf16.msra.mxu0 %v3812_v30  ;;  %3983 = vrsqrt.f32 %v5089_v26  ;;  %v3823_v59 = vld [vmem:[#allocation7 + $0x18c] ss:$24 sps:$4 sm:$0xff]  }
 0x174   : > { %v611_v13 = vsel %vm610_vm8, %v4996_v38, %v609_v37  ;;  %v5094_v42 = vpack.c.bf16 %v908_v55, %v906_v23  ;;  %v3453_v45 = vpack.c.bf16 %v5030_v14, %v906_v23  ;;  %v3454_v1 = vpack.c.bf16 %v5044_v32, %v908_v55  ;;  %2162 = vmatprep.subr.bf16.mxu0 %v3820_v15  ;;  %v3815_v38 = vld [vmem:[#allocation7 + $0x158] ss:$24 sps:$4 sm:$0xff]   ;;  %v4021_v15 = vld [vmem:[%s4522_s11 + $0x68] sm:$0xff] }
 0x175   : > { %v787_v19 = vadd.f32 1e-08, %v755_v61  ;;  %v614_v49 = vsel %vm612_vm9, %v613_v41, %v611_v13  ;;  %1894 = vmatprep.mubr.bf16.mxu1 %v5084_v29  ;;  %v940_v53 = vmul.f32 %v4704_v34, %v865_v17  ;;  %v3469_v48 = vpack.c.bf16 %v939_v50, %v938_v36  ;;  %v5104_v4 = vpop.eup %3971  ;;  %v4023_v22 = vld [vmem:[%s4522_s11 + $0x168] sm:$0xff]  ;;  %v4024_v55 = vld [vmem:[%s4522_s11 + $0x178] sm:$0xff]  ;;  %v4025_v61 = vld [vmem:[%s4522_s11 + $0x60] sm:$0xff] }
 0x176   : > { %v742_v35 = vmul.f32 0.0625, %v614_v49  ;;  %1158 = vst [vmem:[%s4907_s26 + $0x20] sm:$0xff] %v3453_v45  ;;  %1159 = vst [vmem:[%s4907_s26 + $0x28] sm:$0xff] %v3454_v1  ;;  %1815 = vmatmul.mubr.bf16.gmra.mrb[8].mxu0 %v5094_v42  ;;  %1968 = vmatpush1.bf16.msra.mxu1 %v3809_v58  ;;  %vm603_vm10 = vcmp.eq.f32.partialorder %v5057_v46, inf  ;;  %vm605_vm11 = vcmp.eq.f32.partialorder %v5057_v46, 0.0  ;;  %v606_v50 = vand.u32 2147483648, %v5057_v46 }
 0x177   : > { %v5110_v14 = vpop.eup %3973  ;;  %3985 = vrcp.f32 %v787_v19  ;;  %v5113_v32 = vpack.c.bf16 %v940_v53, %v938_v36  ;;  %v3470_v41 = vpack.c.bf16 %v941_v20, %v940_v53  ;;  %1174 = vst [vmem:[%s4907_s26 + $0xa0] sm:$0xff] %v3469_v48  ;;  %1969 = vmatprep.subr.bf16.mxu1 %v3817_v0  ;;  %2163 = vmatpush1.bf16.msra.mxu0 %v3818_v3  ;;  %v725_v62 = vand.u32 2147483648, %v5089_v26  ;;  %v3832_v9 = vld [vmem:[#allocation7 + $0x1c4] ss:$24 sps:$4 sm:$0xff]   ;;  %v4026_v17 = vld [vmem:[%s4522_s11 + $0x70] sm:$0xff] }
 0x178   : > { %v5116_v30 = vpop.eup %3975  ;;  %3987 = vrsqrt.f32 %v5102_v57  ;;  %2164 = vmatprep.subr.bf16.mxu0 %v3826_v25  ;;  %v774_v6 = vadd.f32 1e-08, %v742_v35  ;;  %v836_v16 = vmul.f32 %v4021_v15, %v4885_v21  ;;  %v838_v20 = vmul.f32 %v4022_v43, %v4865_v31  ;;  %v3821_v0 = vld [vmem:[#allocation7 + $0x188] ss:$24 sps:$4 sm:$0xff]   ;;  %v3829_v25 = vld [vmem:[#allocation7 + $0x1bc] ss:$24 sps:$4 sm:$0xff]  }
 0x179   : > { %v5122_v52 = vpop.eup %3977  ;;  %1175 = vst [vmem:[%s4907_s26 + $0xa8] sm:$0xff] %v3470_v41  ;;  %1895 = vmatmul.mubr.bf16.gmra.mrb[8].mxu1 %v5113_v32  ;;  %v868_v27 = vmul.f32 %v4023_v22, %v4903_v2  ;;  %vm722_vm12 = vcmp.eq.f32.partialorder %v5089_v26, inf  ;;  %v718_v23 = vand.u32 2147483648, %v5102_v57  ;;  %v870_v58 = vmul.f32 %v4024_v55, %v4892_v56  ;;  %v4027_v53 = vld [vmem:[%s4522_s11 + $0x160] sm:$0xff]  ;;  %v4028_v41 = vld [vmem:[%s4522_s11 + $0x170] sm:$0xff]  ;;  %v4029_v15 = vld [vmem:[%s4522_s11 + $0x88] sm:$0xff] }
 0x17a   : > { %v3980_v37 = vpop.eup %3979  ;;  %v835_v33 = vmul.f32 %v4025_v61, %v4885_v21  ;;  %v837_v36 = vmul.f32 %v4026_v17, %v4865_v31  ;;  %1970 = vmatpush1.bf16.msra.mxu1 %v3815_v38  ;;  %vm724_vm13 = vcmp.eq.f32.partialorder %v5089_v26, 0.0  ;;  %v911_v45 = vmul.f32 %v4608_v12, %v836_v16  ;;  %v3830_v43 = vld [vmem:[#allocation7 + $0x1c0] ss:$24 sps:$4 sm:$0xff]   ;;  %v4031_v17 = vld [vmem:[%s4522_s11 + $0x188] sm:$0xff] }
 0x17b   : > { %v5140_v3 = vpop.eup %3981  ;;  %v602_v13 = vmul.f32 %v3980_v37, %v5057_v46  ;;  %v913_v1 = vmul.f32 %v4608_v12, %v838_v20  ;;  %v943_v21 = vmul.f32 %v4608_v12, %v868_v27  ;;  %1971 = vmatprep.subr.bf16.mxu1 %v3823_v59  ;;  %vm715_vm14 = vcmp.eq.f32.partialorder %v5102_v57, inf  ;;  %2165 = vmatpush1.bf16.msra.mxu0 %v3824_v11  ;;  %v3827_v27 = vld [vmem:[#allocation7 + $0x1b8] ss:$24 sps:$4 sm:$0xff]  }
 0x17c   : > { %v5149_v31 = vmul.f32 %v4608_v12, %v870_v58  ;;  %v910_v19 = vmul.f32 %v4704_v34, %v835_v33  ;;  %v912_v49 = vmul.f32 %v4704_v34, %v837_v36  ;;  %v867_v48 = vmul.f32 %v4027_v53, %v4903_v2  ;;  %2166 = vmatprep.subr.bf16.mxu0 %v3832_v9  ;;  %v4030_v58 = vld [vmem:[%s4522_s11 + $0x98] sm:$0xff] }
 0x17d   : > { %v604_v35 = vsel %vm603_vm10, %v5057_v46, %v602_v13  ;;  %vm717_vm15 = vcmp.eq.f32.partialorder %v5102_v57, 0.0  ;;  %v5159_v38 = vpack.c.bf16 %v913_v1, %v911_v45  ;;  %v869_v59 = vmul.f32 %v4028_v41, %v4892_v56  ;;  %v3984_v55 = vpop.eup %3983 }
 0x17e   : > { %v840_v16 = vmul.f32 %v4029_v15, %v4928_v47  ;;  %v607_v2 = vsel %vm605_vm11, %v606_v50, %v604_v35  ;;  %v5168_v11 = vpack.c.bf16 %v5149_v31, %v943_v21  ;;  %v5170_v20 = vpack.c.bf16 %v912_v49, %v910_v19  ;;  %1972 = vmatpush1.bf16.msra.mxu1 %v3821_v0  ;;  %v3835_v50 = vld [vmem:[#allocation7 + $0x1ec] ss:$24 sps:$4 sm:$0xff]   ;;  %v4032_v35 = vld [vmem:[%s4522_s11 + $0x198] sm:$0xff] }
 0x17f   : > { %v3455_v22 = vpack.c.bf16 %v911_v45, %v910_v19  ;;  %v741_v56 = vmul.f32 0.0625, %v607_v2  ;;  %1824 = vmatprep.mubr.bf16.mxu0 %v5159_v38  ;;  %v3456_v37 = vpack.c.bf16 %v913_v1, %v912_v49  ;;  %v942_v9 = vmul.f32 %v4704_v34, %v867_v48  ;;  %1973 = vmatprep.subr.bf16.mxu1 %v3829_v25  ;;  %v3838_v0 = vld [vmem:[#allocation7 + $0x1f4] ss:$24 sps:$4 sm:$0xff]   ;;  %v3836_v19 = vld [vmem:[#allocation7 + $0x1f0] ss:$24 sps:$4 sm:$0xff]  }
 0x180   : > { %v944_v46 = vmul.f32 %v4704_v34, %v869_v59  ;;  %3989 = vrcp.f32 %v774_v6  ;;  %1904 = vmatprep.mubr.bf16.mxu1 %v5168_v11  ;;  %1825 = vmatmul.mubr.bf16.gmra.mrb[12].mxu0 %v5170_v20  ;;  %v842_v61 = vmul.f32 %v4030_v58, %v4915_v8  ;;  %v5181_v33 = vmul.f32 %v4608_v12, %v840_v16  ;;  %v3844_v2 = vld [vmem:[#allocation7 + $0x224] ss:$24 sps:$4 sm:$0xff]   ;;  %v3842_v58 = vld [vmem:[#allocation7 + $0x220] ss:$24 sps:$4 sm:$0xff]  }
 0x181   : > { %1160 = vst [vmem:[%s4907_s26 + $0x30] sm:$0xff] %v3455_v22  ;;  %v872_v36 = vmul.f32 %v4031_v17, %v4962_v51  ;;  %v5185_v13 = vpop.eup %3985  ;;  %v773_v45 = vadd.f32 1e-08, %v741_v56  ;;  %v721_v6 = vmul.f32 %v3984_v55, %v5089_v26  ;;  %1161 = vst [vmem:[%s4907_s26 + $0x38] sm:$0xff] %v3456_v37  ;;  %v3471_v25 = vpack.c.bf16 %v943_v21, %v942_v9  ;;  %v4034_v37 = vld [vmem:[%s4522_s11 + $0x90] sm:$0xff] }
 0x182   : > { %v5189_v1 = vpack.c.bf16 %v944_v46, %v942_v9  ;;  %2167 = vmatpush1.bf16.msra.mxu0 %v3830_v43  ;;  %v3988_v49 = vpop.eup %3987  ;;  %v3472_v53 = vpack.c.bf16 %v5149_v31, %v944_v46  ;;  %v917_v48 = vmul.f32 %v4608_v12, %v842_v61  ;;  %v874_v41 = vmul.f32 %v4032_v35, %v4949_v44  ;;  %v4033_v31 = vld [vmem:[%s4522_s11 + $0x80] sm:$0xff] }
 0x183   : > { %v5196_v59 = vmul.f32 %v4608_v12, %v872_v36  ;;  %1974 = vmatpush1.bf16.msra.mxu1 %v3827_v27  ;;  %3991 = vrcp.f32 %v773_v45  ;;  %v723_v21 = vsel %vm722_vm12, %v5089_v26, %v721_v6  ;;  %v714_v15 = vmul.f32 %v3988_v49, %v5102_v57  ;;  %1176 = vst [vmem:[%s4907_s26 + $0xb0] sm:$0xff] %v3471_v25  ;;  %v3833_v43 = vld [vmem:[#allocation7 + $0x1e8] ss:$24 sps:$4 sm:$0xff]   ;;  %v3841_v55 = vld [vmem:[#allocation7 + $0x21c] ss:$24 sps:$4 sm:$0xff]  }
 0x184   : > { %1905 = vmatmul.mubr.bf16.gmra.mrb[12].mxu1 %v5189_v1  ;;  %v839_v16 = vmul.f32 %v4033_v31, %v4928_v47  ;;  %1975 = vmatprep.subr.bf16.mxu1 %v3835_v50  ;;  %v726_v22 = vsel %vm724_vm13, %v725_v62, %v723_v21  ;;  %1177 = vst [vmem:[%s4907_s26 + $0xb8] sm:$0xff] %v3472_v53  ;;  %v4035_v26 = vld [vmem:[%s4522_s11 + $0x180] sm:$0xff]  ;;  %v4036_v36 = vld [vmem:[%s4522_s11 + $0x190] sm:$0xff]  ;;  %v4037_v53 = vld [vmem:[%s4522_s11 + $0xa8] sm:$0xff] }
 0x185   : > { %v5212_v27 = vpack.c.bf16 %v917_v48, %v5181_v33  ;;  %v949_v56 = vmul.f32 %v4608_v12, %v874_v41  ;;  %v841_v9 = vmul.f32 %v4034_v37, %v4915_v8  ;;  %2168 = vmatprep.subr.bf16.mxu0 %v3838_v0  ;;  %v758_v47 = vmul.f32 0.0625, %v726_v22  ;;  %v4038_v21 = vld [vmem:[%s4522_s11 + $0xb8] sm:$0xff]  ;;  %v3848_v37 = vld [vmem:[#allocation7 + $0x250] ss:$24 sps:$4 sm:$0xff]  }
 0x186   : > { %v716_v46 = vsel %vm715_vm14, %v5102_v57, %v714_v15  ;;  %v914_v50 = vmul.f32 %v4704_v34, %v839_v16  ;;  %v871_v62 = vmul.f32 %v4035_v26, %v4962_v51  ;;  %2169 = vmatpush1.bf16.msra.mxu0 %v3836_v19  ;;  %v873_v0 = vmul.f32 %v4036_v36, %v4949_v44  ;;  %v3839_v51 = vld [vmem:[#allocation7 + $0x218] ss:$24 sps:$4 sm:$0xff]  }
 0x187   : > { %v719_v61 = vsel %vm717_vm15, %v718_v23, %v716_v46  ;;  %1834 = vmatprep.mubr.bf16.mxu0 %v5212_v27  ;;  %v5229_v8 = vpack.c.bf16 %v949_v56, %v5196_v59  ;;  %v916_v17 = vmul.f32 %v4704_v34, %v841_v9  ;;  %v790_v45 = vadd.f32 1e-08, %v758_v47  ;;  %1976 = vmatpush1.bf16.msra.mxu1 %v3833_v43  ;;  %v3850_v23 = vld [vmem:[#allocation7 + $0x254] ss:$24 sps:$4 sm:$0xff]  }
 0x188   : > { %v757_v6 = vmul.f32 0.0625, %v719_v61  ;;  %v3457_v25 = vpack.c.bf16 %v5181_v33, %v914_v50  ;;  %v946_v57 = vmul.f32 %v4704_v34, %v871_v62  ;;  %2170 = vmatprep.subr.bf16.mxu0 %v3844_v2  ;;  %v948_v44 = vmul.f32 %v4704_v34, %v873_v0  ;;  %1977 = vmatprep.subr.bf16.mxu1 %v3841_v55  ;;  %v4039_v2 = vld [vmem:[%s4522_s11 + $0x1a8] sm:$0xff]  ;;  %v4040_v47 = vld [vmem:[%s4522_s11 + $0x1b8] sm:$0xff]  ;;  %v4042_v62 = vld [vmem:[%s4522_s11 + $0xb0] sm:$0xff] }
 0x189   : > { %1914 = vmatprep.mubr.bf16.mxu1 %v5229_v8  ;;  %v5237_v19 = vpack.c.bf16 %v916_v17, %v914_v50  ;;  %v3458_v49 = vpack.c.bf16 %v917_v48, %v916_v17  ;;  %v844_v35 = vmul.f32 %v4037_v53, %v4982_v18  ;;  %3993 = vrcp.f32 %v790_v45  ;;  %v3847_v48 = vld [vmem:[#allocation7 + $0x24c] ss:$24 sps:$4 sm:$0xff]   ;;  %v3845_v0 = vld [vmem:[#allocation7 + $0x248] ss:$24 sps:$4 sm:$0xff]  }
 0x18a   : > { %v789_v41 = vadd.f32 1e-08, %v757_v6  ;;  %1162 = vst [vmem:[%s4907_s26 + $0x40] sm:$0xff] %v3457_v25  ;;  %v3473_v33 = vpack.c.bf16 %v5196_v59, %v946_v57  ;;  %v846_v15 = vmul.f32 %v4038_v21, %v4976_v5  ;;  %2171 = vmatpush1.bf16.msra.mxu0 %v3842_v58  ;;  %v5246_v31 = vpop.eup %3989  ;;  %v5250_v16 = vpack.c.bf16 %v948_v44, %v946_v57  ;;  %v4041_v50 = vld [vmem:[%s4522_s11 + $0xa0] sm:$0xff]  ;;  %v4044_v17 = vld [vmem:[%s4522_s11 + $0x1b0] sm:$0xff]  ;;  %v4045_v25 = vld [vmem:[%s4522_s11 + $0xc8] sm:$0xff] }
 0x18b   : > { %1163 = vst [vmem:[%s4907_s26 + $0x48] sm:$0xff] %v3458_v49  ;;  %1835 = vmatmul.mubr.bf16.gmra.mrb[16].mxu0 %v5237_v19  ;;  %v3474_v43 = vpack.c.bf16 %v949_v56, %v948_v44  ;;  %v919_v59 = vmul.f32 %v4608_v12, %v844_v35  ;;  %v876_v22 = vmul.f32 %v4039_v2, %v5110_v14  ;;  %v4043_v58 = vld [vmem:[%s4522_s11 + $0x1a0] sm:$0xff] }
 0x18c   : > { %3995 = vrcp.f32 %v789_v41  ;;  %1178 = vst [vmem:[%s4907_s26 + $0xc0] sm:$0xff] %v3473_v33  ;;  %v921_v9 = vmul.f32 %v4608_v12, %v846_v15  ;;  %v878_v46 = vmul.f32 %v4040_v47, %v5104_v4  ;;  %v843_v26 = vmul.f32 %v4041_v50, %v4982_v18  ;;  %1978 = vmatpush1.bf16.msra.mxu1 %v3839_v51  ;;  %v4047_v41 = vld [vmem:[%s4522_s11 + $0x1c8] sm:$0xff]  ;;  %v3853_v21 = vld [vmem:[#allocation7 + $0x27c] ss:$24 sps:$4 sm:$0xff]  }
 0x18d   : > { %2172 = vmatprep.subr.bf16.mxu0 %v3850_v23  ;;  %1179 = vst [vmem:[%s4907_s26 + $0xc8] sm:$0xff] %v3474_v43  ;;  %1915 = vmatmul.mubr.bf16.gmra.mrb[16].mxu1 %v5250_v16  ;;  %v951_v56 = vmul.f32 %v4608_v12, %v876_v22  ;;  %v845_v55 = vmul.f32 %v4042_v62, %v4976_v5  ;;  %v5270_v18 = vpop.eup %3991  ;;  %v4046_v23 = vld [vmem:[%s4522_s11 + $0xd8] sm:$0xff]  ;;  %v4049_v50 = vld [vmem:[%s4522_s11 + $0xc0] sm:$0xff] }
 0x18e   : > { %v875_v61 = vmul.f32 %v4043_v58, %v5110_v14  ;;  %v877_v36 = vmul.f32 %v4044_v17, %v5104_v4  ;;  %v5272_v51 = vpack.c.bf16 %v921_v9, %v919_v59  ;;  %v953_v45 = vmul.f32 %v4608_v12, %v878_v46  ;;  %1979 = vmatprep.subr.bf16.mxu1 %v3847_v48 }
 0x18f   : > { %v918_v6 = vmul.f32 %v4704_v34, %v843_v26  ;;  %v848_v5 = vmul.f32 %v4045_v25, %v5122_v52  ;;  %v920_v57 = vmul.f32 %v4704_v34, %v845_v55  ;;  %v850_v49 = vmul.f32 %v4046_v23, %v5116_v30  ;;  %2173 = vmatpush1.bf16.msra.mxu0 %v3848_v37  ;;  %v4048_v37 = vld [vmem:[%s4522_s11 + $0x1d8] sm:$0xff]  ;;  %v4051_v55 = vld [vmem:[%s4522_s11 + $0x1c0] sm:$0xff]  ;;  %v4053_v25 = vld [vmem:[%s4522_s11 + $0xe8] sm:$0xff] }
 0x190   : > { %v950_v14 = vmul.f32 %v4704_v34, %v875_v61  ;;  %v952_v4 = vmul.f32 %v4704_v34, %v877_v36  ;;  %1844 = vmatprep.mubr.bf16.mxu0 %v5272_v51  ;;  %v5284_v44 = vpack.c.bf16 %v953_v45, %v951_v56  ;;  %v880_v33 = vmul.f32 %v4047_v41, %v5185_v13  ;;  %v4052_v61 = vld [vmem:[%s4522_s11 + $0x1d0] sm:$0xff] }
 0x191   : > { %v3459_v53 = vpack.c.bf16 %v919_v59, %v918_v6  ;;  %v5287_v35 = vmul.f32 %v4608_v12, %v848_v5  ;;  %v5291_v15 = vpack.c.bf16 %v920_v57, %v918_v6  ;;  %v3460_v48 = vpack.c.bf16 %v921_v9, %v920_v57  ;;  %1980 = vmatpush1.bf16.msra.mxu1 %v3845_v0  ;;  %v3856_v9 = vld [vmem:[#allocation7 + $0x284] ss:$24 sps:$4 sm:$0xff]   ;;  %v3851_v36 = vld [vmem:[#allocation7 + $0x278] ss:$24 sps:$4 sm:$0xff]  }
 0x192   : > { %v5293_v43 = vpack.c.bf16 %v952_v4, %v950_v14  ;;  %v3475_v2 = vpack.c.bf16 %v951_v56, %v950_v14  ;;  %1924 = vmatprep.mubr.bf16.mxu1 %v5284_v44  ;;  %v3476_v59 = vpack.c.bf16 %v953_v45, %v952_v4  ;;  %v925_v22 = vmul.f32 %v4608_v12, %v850_v49  ;;  %v4050_v56 = vld [vmem:[%s4522_s11 + $0xd0] sm:$0xff]  ;;  %v4054_v5 = vld [vmem:[%s4522_s11 + $0xf8] sm:$0xff] }
 0x193   : > { %1164 = vst [vmem:[%s4907_s26 + $0x50] sm:$0xff] %v3459_v53  ;;  %v882_v47 = vmul.f32 %v4048_v37, %v5140_v3  ;;  %v955_v46 = vmul.f32 %v4608_v12, %v880_v33  ;;  %1165 = vst [vmem:[%s4907_s26 + $0x58] sm:$0xff] %v3460_v48  ;;  %1845 = vmatmul.mubr.bf16.gmra.mrb[20].mxu0 %v5291_v15  ;;  %v847_v26 = vmul.f32 %v4049_v50, %v5122_v52  ;;  %v3994_v0 = vpop.eup %3993  ;;  %v3854_v57 = vld [vmem:[#allocation7 + $0x280] ss:$24 sps:$4 sm:$0xff]   ;;  %v3859_v23 = vld [vmem:[#allocation7 + $0x2ac] ss:$24 sps:$4 sm:$0xff]  }
 0x194   : > { %1180 = vst [vmem:[%s4907_s26 + $0xd0] sm:$0xff] %v3475_v2  ;;  %v849_v62 = vmul.f32 %v4050_v56, %v5116_v30  ;;  %v879_v58 = vmul.f32 %v4051_v55, %v5185_v13  ;;  %v881_v17 = vmul.f32 %v4052_v61, %v5140_v3  ;;  %1181 = vst [vmem:[%s4907_s26 + $0xd8] sm:$0xff] %v3476_v59  ;;  %1981 = vmatprep.subr.bf16.mxu1 %v3853_v21  ;;  %v3862_v49 = vld [vmem:[#allocation7 + $0x2b4] ss:$24 sps:$4 sm:$0xff]  }
 0x195   : > { %v5314_v45 = vpack.c.bf16 %v925_v22, %v5287_v35  ;;  %v957_v6 = vmul.f32 %v4608_v12, %v882_v47  ;;  %v852_v52 = vmul.f32 %v4053_v25, %v5270_v18  ;;  %v854_v30 = vmul.f32 %v4054_v5, %v5246_v31  ;;  %1925 = vmatmul.mubr.bf16.gmra.mrb[20].mxu1 %v5293_v43  ;;  %v3857_v47 = vld [vmem:[#allocation7 + $0x2a8] ss:$24 sps:$4 sm:$0xff]   ;;  %v3865_v61 = vld [vmem:[#allocation7 + $0x2dc] ss:$24 sps:$4 sm:$0xff]  }
 0x196   : > { %v922_v3 = vmul.f32 %v4704_v34, %v847_v26  ;;  %v924_v13 = vmul.f32 %v4704_v34, %v849_v62  ;;  %v954_v14 = vmul.f32 %v4704_v34, %v879_v58  ;;  %v956_v4 = vmul.f32 %v4704_v34, %v881_v17  ;;  %v3996_v53 = vpop.eup %3995  ;;  %2174 = vmatprep.subr.bf16.mxu0 %v3856_v9  ;;  %v3860_v9 = vld [vmem:[#allocation7 + $0x2b0] ss:$24 sps:$4 sm:$0xff]   ;;  %v4056_v62 = vld [vmem:[%s4522_s11 + $0x1f8] sm:$0xff]  ;;  %v4057_v58 = vld [vmem:[%s4522_s11 + $0xe0] sm:$0xff] }
 0x197   : > { %1854 = vmatprep.mubr.bf16.mxu0 %v5314_v45  ;;  %v5327_v41 = vpack.c.bf16 %v957_v6, %v955_v46  ;;  %v927_v33 = vmul.f32 %v4608_v12, %v852_v52  ;;  %v929_v21 = vmul.f32 %v4608_v12, %v854_v30  ;;  %1982 = vmatpush1.bf16.msra.mxu1 %v3851_v36  ;;  %v4058_v17 = vld [vmem:[%s4522_s11 + $0xf0] sm:$0xff]  ;;  %v3868_v30 = vld [vmem:[#allocation7 + $0x2e4] ss:$24 sps:$4 sm:$0xff]  }
 0x198   : > { %v5331_v48 = vpack.c.bf16 %v924_v13, %v922_v3  ;;  %v3461_v2 = vpack.c.bf16 %v5287_v35, %v922_v3  ;;  %v3462_v59 = vpack.c.bf16 %v925_v22, %v924_v13  ;;  %v5334_v37 = vpack.c.bf16 %v956_v4, %v954_v14  ;;  %2175 = vmatpush1.bf16.msra.mxu0 %v3854_v57  ;;  %v4055_v35 = vld [vmem:[%s4522_s11 + $0x1e8] sm:$0xff]  ;;  %v4060_v52 = vld [vmem:[%s4522_s11 + $0x1f0] sm:$0xff] }
 0x199   : > { %1934 = vmatprep.mubr.bf16.mxu1 %v5327_v41  ;;  %v3477_v50 = vpack.c.bf16 %v955_v46, %v954_v14  ;;  %v3478_v26 = vpack.c.bf16 %v957_v6, %v956_v4  ;;  %v5337_v56 = vpack.c.bf16 %v929_v21, %v927_v33  ;;  %v884_v22 = vmul.f32 %v4055_v35, %v3996_v53  ;;  %v4059_v6 = vld [vmem:[%s4522_s11 + $0x1e0] sm:$0xff]  ;;  %s4153_s11 = scalar_lea.vmem %s4152_s9, 8192 }
 0x19a   : > { %1166 = vst [vmem:[%s4907_s26 + $0x60] sm:$0xff] %v3461_v2  ;;  %1167 = vst [vmem:[%s4907_s26 + $0x68] sm:$0xff] %v3462_v59  ;;  %v886_v55 = vmul.f32 %v4056_v62, %v3994_v0  ;;  %1983 = vmatprep.subr.bf16.mxu1 %v3859_v23  ;;  %2176 = vmatprep.subr.bf16.mxu0 %v3862_v49  ;;  %v851_v46 = vmul.f32 %v4057_v58, %v5270_v18  ;;  %v3863_v18 = vld [vmem:[#allocation7 + $0x2d8] ss:$24 sps:$4 sm:$0xff]   ;;  %p4155_p9 = scmp.lt.s32.totalorder %s4153_s11, %s4147_s7 }
 0x19b   : > { %1182 = vst [vmem:[%s4907_s26 + $0xe0] sm:$0xff] %v3477_v50  ;;  %1183 = vst [vmem:[%s4907_s26 + $0xe8] sm:$0xff] %v3478_v26  ;;  %v853_v36 = vmul.f32 %v4058_v17, %v5246_v31  ;;  %v883_v25 = vmul.f32 %v4059_v6, %v3996_v53  ;;  %v885_v5 = vmul.f32 %v4060_v52, %v3994_v0  ;;  %1855 = vmatmul.mubr.bf16.gmra.mrb[24].mxu0 %v5331_v48  ;;  %v3866_v4 = vld [vmem:[#allocation7 + $0x2e0] ss:$24 sps:$4 sm:$0xff]  }
 0x19c   : > { %v959_v57 = vmul.f32 %v4608_v12, %v884_v22  ;;  %v961_v3 = vmul.f32 %v4608_v12, %v886_v55  ;;  %v926_v13 = vmul.f32 %v4704_v34, %v851_v46  ;;  %1984 = vmatpush1.bf16.msra.mxu1 %v3857_v47  ;;  %1864 = vmatprep.mubr.bf16.mxu0 %v5337_v56  ;;  %p4156_p2 = por %p4155_p9, %p4154_p5 }
 0x19d   : > { %v928_v31 = vmul.f32 %v4704_v34, %v853_v36  ;;  %v958_v14 = vmul.f32 %v4704_v34, %v883_v25  ;;  %v960_v0 = vmul.f32 %v4704_v34, %v885_v5  ;;  %2177 = vmatpush1.bf16.msra.mxu0 %v3860_v9  ;;  %1935 = vmatmul.mubr.bf16.gmra.mrb[24].mxu1 %v5334_v37 }
 0x19e   : > { %v5360_v12 = vpack.c.bf16 %v961_v3, %v959_v57  ;;  %v3463_v23 = vpack.c.bf16 %v927_v33, %v926_v13  ;;  %1985 = vmatprep.subr.bf16.mxu1 %v3865_v61  ;;  %2178 = vmatprep.subr.bf16.mxu0 %v3868_v30  ;;  %p4157_p3 = pnand %p4156_p2, %p4150_p0 }
 0x19f   : > { %v3464_v49 = vpack.c.bf16 %v929_v21, %v928_v31  ;;  %v3479_v53 = vpack.c.bf16 %v959_v57, %v958_v14  ;;  %v3480_v2 = vpack.c.bf16 %v961_v3, %v960_v0  ;;  %v976_v34 = vpack.c.bf16 %v928_v31, %v926_v13 }
 0x1a0   : > { %1944 = vmatprep.mubr.bf16.mxu1 %v5360_v12  ;;  %1168 = vst [vmem:[%s4907_s26 + $0x70] sm:$0xff] %v3463_v23  ;;  %1986 = vmatpush1.bf16.msra.mxu1 %v3863_v18  ;;  %v5366_v59 = vpack.c.bf16 %v960_v0, %v958_v14 }
 0x1a1   : > { %1169 = vst [vmem:[%s4907_s26 + $0x78] sm:$0xff] %v3464_v49  ;;  %1184 = vst [vmem:[%s4907_s26 + $0xf0] sm:$0xff] %v3479_v53  ;;  %2179 = vmatpush1.bf16.msra.mxu0 %v3866_v4 }
 0x1a2   : > { %1185 = vst [vmem:[%s4907_s26 + $0xf8] sm:$0xff] %v3480_v2 }
 0x1a3   : > { %1865 = vmatmul.mubr.bf16.gmra.mrb[28].mxu0 %v976_v34 }
 0x1a4   : > { %2180 = vmatprep.mubr.bf16.mxu0 %v4861_v28 }
 0x1a5   : > { %1945 = vmatmul.mubr.bf16.gmra.mrb[28].mxu1 %v5366_v59 }
 0x1a6   : > { %1987 = vmatprep.mubr.bf16.mxu1 %v4861_v28 }
 0x1ab   : > { %2181 = vmatmul.mubr.bf16.vlgmr.msra.gmra.mrb[32].mxu0 %v4899_v60 }
 0x1ac   : > { %2190 = vmatprep.mubr.bf16.mxu0 %v4953_v39 }
 0x1ad   : > { %1988 = vmatmul.mubr.bf16.vlgmr.msra.gmra.mrb[32].mxu1 %v4899_v60 }
 0x1ae   : > { %1997 = vmatprep.mubr.bf16.mxu1 %v4953_v39 }
 0x1b3   : > { %2191 = vmatmul.mubr.bf16.gmra.mrb[36].mxu0 %v4984_v63 }
 0x1b4   : > { %2200 = vmatprep.mubr.bf16.mxu0 %v5054_v40 }
 0x1b5   : > { %1998 = vmatmul.mubr.bf16.gmra.mrb[36].mxu1 %v4984_v63 }
 0x1b6   : > { %2007 = vmatprep.mubr.bf16.mxu1 %v5054_v40 }
 0x1bb   : > { %2201 = vmatmul.mubr.bf16.gmra.mrb[40].mxu0 %v5094_v42 }
 0x1bc   : > { %2210 = vmatprep.mubr.bf16.mxu0 %v5159_v38 }
 0x1bd   : > { %2008 = vmatmul.mubr.bf16.gmra.mrb[40].mxu1 %v5094_v42 }
 0x1be   : > { %2017 = vmatprep.mubr.bf16.mxu1 %v5159_v38 }
 0x1c3   : > { %2211 = vmatmul.mubr.bf16.gmra.mrb[44].mxu0 %v5170_v20 }
 0x1c4   : > { %2220 = vmatprep.mubr.bf16.mxu0 %v5212_v27 }
 0x1c5   : > { %2018 = vmatmul.mubr.bf16.gmra.mrb[44].mxu1 %v5170_v20 }
 0x1c6   : > { %2027 = vmatprep.mubr.bf16.mxu1 %v5212_v27 }
 0x1cb   : > { %2221 = vmatmul.mubr.bf16.gmra.mrb[48].mxu0 %v5237_v19 }
 0x1cc   : > { %2230 = vmatprep.mubr.bf16.mxu0 %v5272_v51 }
 0x1cd   : > { %2028 = vmatmul.mubr.bf16.gmra.mrb[48].mxu1 %v5237_v19 }
 0x1ce   : > { %2037 = vmatprep.mubr.bf16.mxu1 %v5272_v51 }
 0x1d3   : > { %2231 = vmatmul.mubr.bf16.gmra.mrb[52].mxu0 %v5291_v15 }
 0x1d4   : > { %2240 = vmatprep.mubr.bf16.mxu0 %v5314_v45 }
 0x1d5   : > { %2038 = vmatmul.mubr.bf16.gmra.mrb[52].mxu1 %v5291_v15 }
 0x1d6   : > { %2047 = vmatprep.mubr.bf16.mxu1 %v5314_v45 }
 0x1db   : > { %2241 = vmatmul.mubr.bf16.gmra.mrb[56].mxu0 %v5331_v48 }
 0x1dc   : > { %2250 = vmatprep.mubr.bf16.mxu0 %v5337_v56 }
 0x1dd   : > { %2048 = vmatmul.mubr.bf16.gmra.mrb[56].mxu1 %v5331_v48 }
 0x1de   : > { %2057 = vmatprep.mubr.bf16.mxu1 %v5337_v56 }
 0x1e3   : > { %2251 = vmatmul.mubr.bf16.gmra.mrb[60].mxu0 %v976_v34 }
 0x1e4   : > { %2260 = vmatprep.mubr.bf16.mxu0 %v4887_v54 }
 0x1e5   : > { %2058 = vmatmul.mubr.bf16.gmra.mrb[60].mxu1 %v976_v34 }
 0x1e6   : > { %2067 = vmatprep.mubr.bf16.mxu1 %v4887_v54 }
 0x1eb   : > { %2261 = vmatmul.mubr.bf16.gmra.mrb[64].mxu0 %v4917_v10 }
 0x1ec   : > { %2270 = vmatprep.mubr.bf16.mxu0 %v4980_v7 }
 0x1ed   : > { %2068 = vmatmul.mubr.bf16.gmra.mrb[64].mxu1 %v4917_v10 }
 0x1ee   : > { %2077 = vmatprep.mubr.bf16.mxu1 %v4980_v7 }
 0x1f3   : > { %2271 = vmatmul.mubr.bf16.gmra.mrb[68].mxu0 %v4987_v24 }
 0x1f4   : > { %2280 = vmatprep.mubr.bf16.mxu0 %v5084_v29 }
 0x1f5   : > { %2078 = vmatmul.mubr.bf16.gmra.mrb[68].mxu1 %v4987_v24 }
 0x1f6   : > { %2087 = vmatprep.mubr.bf16.mxu1 %v5084_v29 }
 0x1fb   : > { %2281 = vmatmul.mubr.bf16.gmra.mrb[72].mxu0 %v5113_v32 }
 0x1fc   : > { %2290 = vmatprep.mubr.bf16.mxu0 %v5168_v11 }
 0x1fd   : > { %2088 = vmatmul.mubr.bf16.gmra.mrb[72].mxu1 %v5113_v32 }
 0x1fe   : > { %2097 = vmatprep.mubr.bf16.mxu1 %v5168_v11 }
 0x203   : > { %2291 = vmatmul.mubr.bf16.gmra.mrb[76].mxu0 %v5189_v1 }
 0x204   : > { %2300 = vmatprep.mubr.bf16.mxu0 %v5229_v8 }
 0x205   : > { %2098 = vmatmul.mubr.bf16.gmra.mrb[76].mxu1 %v5189_v1 }
 0x206   : > { %2107 = vmatprep.mubr.bf16.mxu1 %v5229_v8 }
 0x20b   : > { %2301 = vmatmul.mubr.bf16.gmra.mrb[80].mxu0 %v5250_v16 }
 0x20c   : > { %2310 = vmatprep.mubr.bf16.mxu0 %v5284_v44 }
 0x20d   : > { %2108 = vmatmul.mubr.bf16.gmra.mrb[80].mxu1 %v5250_v16 }
 0x20e   : > { %2117 = vmatprep.mubr.bf16.mxu1 %v5284_v44 }
 0x213   : > { %2311 = vmatmul.mubr.bf16.gmra.mrb[84].mxu0 %v5293_v43 }
 0x214   : > { %2320 = vmatprep.mubr.bf16.mxu0 %v5327_v41 }
 0x215   : > { %2118 = vmatmul.mubr.bf16.gmra.mrb[84].mxu1 %v5293_v43 }
 0x216   : > { %2127 = vmatprep.mubr.bf16.mxu1 %v5327_v41 }
 0x21b   : > { %2321 = vmatmul.mubr.bf16.gmra.mrb[88].mxu0 %v5334_v37 }
 0x21c   : > { %2330 = vmatprep.mubr.bf16.mxu0 %v5360_v12 }
 0x21d   : > { %2128 = vmatmul.mubr.bf16.gmra.mrb[88].mxu1 %v5334_v37 }
 0x21e   : > { %2137 = vmatprep.mubr.bf16.mxu1 %v5360_v12 }
 0x223   : > { %2331 = vmatmul.mubr.bf16.gmra.mrb[92].mxu0 %v5366_v59 }
 0x225   : > { %2138 = vmatmul.mubr.bf16.gmra.mrb[92].mxu1 %v5366_v59 }
 0x22c   : > { %v1796_v28 = vpop.f32.mrb[0].mxu0 }
 0x22d   : > { %v1798_v54 = vpop.f32.mrb[1].mxu0 }
 0x22e   : > { %v3481_v60 = vpack.c.bf16 %v1798_v54, %v1796_v28  ;;  %v1800_v10 = vpop.f32.mrb[2].mxu0 }
 0x22f   : > { %v1876_v39 = vpop.f32.mrb[0].mxu1  ;;  %v1802_v7 = vpop.f32.mrb[3].mxu0 }
 0x230   : > { %2917 = vst [vmem:[%s5433_s5] sm:$0xff] %v3481_v60  ;;  %v1878_v63 = vpop.f32.mrb[1].mxu1  ;;  %v3484_v24 = vpack.c.bf16 %v1802_v7, %v1800_v10 }
 0x231   : > { %v3529_v40 = vpack.c.bf16 %v1878_v63, %v1876_v39  ;;  %v1880_v29 = vpop.f32.mrb[2].mxu1 }
 0x232   : > { %2920 = vst [vmem:[%s5433_s5 + $0x18] sm:$0xff] %v3484_v24  ;;  %v1882_v42 = vpop.f32.mrb[3].mxu1 }
 0x233   : > { %2965 = vst [vmem:[%s5433_s5 + $0x180] sm:$0xff] %v3529_v40  ;;  %v3532_v32 = vpack.c.bf16 %v1882_v42, %v1880_v29 }
 0x235   : > { %2968 = vst [vmem:[%s5433_s5 + $0x198] sm:$0xff] %v3532_v32 }
 0x237   : > { %v1806_v38 = vpop.f32.mrb[4].mxu0 }
 0x238   : > { %v1886_v11 = vpop.f32.mrb[4].mxu1  ;;  %v1808_v20 = vpop.f32.mrb[5].mxu0 }
 0x239   : > { %v1888_v1 = vpop.f32.mrb[5].mxu1  ;;  %v3487_v27 = vpack.c.bf16 %v1808_v20, %v1806_v38  ;;  %v1810_v19 = vpop.f32.mrb[6].mxu0 }
 0x23a   : > { %v3535_v8 = vpack.c.bf16 %v1888_v1, %v1886_v11  ;;  %v1890_v16 = vpop.f32.mrb[6].mxu1  ;;  %v1812_v51 = vpop.f32.mrb[7].mxu0 }
 0x23b   : > { %v1892_v44 = vpop.f32.mrb[7].mxu1  ;;  %2923 = vst [vmem:[%s5433_s5 + $0x30] sm:$0xff] %v3487_v27  ;;  %v3490_v15 = vpack.c.bf16 %v1812_v51, %v1810_v19 }
 0x23c   : > { %2971 = vst [vmem:[%s5433_s5 + $0x1b0] sm:$0xff] %v3535_v8  ;;  %v3538_v43 = vpack.c.bf16 %v1892_v44, %v1890_v16 }
 0x23d   : > { %2926 = vst [vmem:[%s5433_s5 + $0x48] sm:$0xff] %v3490_v15 }
 0x23e   : > { %2974 = vst [vmem:[%s5433_s5 + $0x1c8] sm:$0xff] %v3538_v43 }
 0x249   : > { %v1816_v45 = vpop.f32.mrb[8].mxu0 }
 0x24a   : > { %v1818_v41 = vpop.f32.mrb[9].mxu0 }
 0x24b   : > { %v3493_v33 = vpack.c.bf16 %v1818_v41, %v1816_v45  ;;  %v1820_v21 = vpop.f32.mrb[10].mxu0 }
 0x24c   : > { %v1896_v48 = vpop.f32.mrb[8].mxu1  ;;  %v1822_v37 = vpop.f32.mrb[11].mxu0 }
 0x24d   : > { %2929 = vst [vmem:[%s5433_s5 + $0x60] sm:$0xff] %v3493_v33  ;;  %v1898_v47 = vpop.f32.mrb[9].mxu1  ;;  %v3496_v50 = vpack.c.bf16 %v1822_v37, %v1820_v21 }
 0x24e   : > { %v3541_v26 = vpack.c.bf16 %v1898_v47, %v1896_v48  ;;  %v1900_v56 = vpop.f32.mrb[10].mxu1 }
 0x24f   : > { %2932 = vst [vmem:[%s5433_s5 + $0x78] sm:$0xff] %v3496_v50  ;;  %v1902_v9 = vpop.f32.mrb[11].mxu1 }
 0x250   : > { %2977 = vst [vmem:[%s5433_s5 + $0x1e0] sm:$0xff] %v3541_v26  ;;  %v3544_v35 = vpack.c.bf16 %v1902_v9, %v1900_v56 }
 0x252   : > { %2980 = vst [vmem:[%s5433_s5 + $0x1f8] sm:$0xff] %v3544_v35 }
 0x253   : > { %v1826_v22 = vpop.f32.mrb[12].mxu0 }
 0x254   : > { %v1828_v62 = vpop.f32.mrb[13].mxu0 }
 0x255   : > { %v3499_v55 = vpack.c.bf16 %v1828_v62, %v1826_v22  ;;  %v1830_v58 = vpop.f32.mrb[14].mxu0 }
 0x256   : > { %v1832_v61 = vpop.f32.mrb[15].mxu0 }
 0x257   : > { %v1906_v46 = vpop.f32.mrb[12].mxu1  ;;  %2935 = vst [vmem:[%s5433_s5 + $0x90] sm:$0xff] %v3499_v55  ;;  %v3502_v36 = vpack.c.bf16 %v1832_v61, %v1830_v58 }
 0x258   : > { %v1908_v17 = vpop.f32.mrb[13].mxu1 }
 0x259   : > { %v3547_v6 = vpack.c.bf16 %v1908_v17, %v1906_v46  ;;  %v1910_v25 = vpop.f32.mrb[14].mxu1  ;;  %2938 = vst [vmem:[%s5433_s5 + $0xa8] sm:$0xff] %v3502_v36 }
 0x25a   : > { %v1912_v52 = vpop.f32.mrb[15].mxu1 }
 0x25b   : > { %2983 = vst [vmem:[%s5433_s5 + $0x210] sm:$0xff] %v3547_v6  ;;  %v3550_v5 = vpack.c.bf16 %v1912_v52, %v1910_v25 }
 0x25d   : > { %2986 = vst [vmem:[%s5433_s5 + $0x228] sm:$0xff] %v3550_v5 }
 0x25e   : > { %v1836_v30 = vpop.f32.mrb[16].mxu0 }
 0x25f   : > { %v1838_v57 = vpop.f32.mrb[17].mxu0 }
 0x260   : > { %v1916_v3 = vpop.f32.mrb[16].mxu1  ;;  %v3505_v13 = vpack.c.bf16 %v1838_v57, %v1836_v30  ;;  %v1840_v18 = vpop.f32.mrb[18].mxu0 }
 0x261   : > { %v1918_v31 = vpop.f32.mrb[17].mxu1  ;;  %v1842_v14 = vpop.f32.mrb[19].mxu0 }
 0x262   : > { %2941 = vst [vmem:[%s5433_s5 + $0xc0] sm:$0xff] %v3505_v13  ;;  %v3553_v0 = vpack.c.bf16 %v1918_v31, %v1916_v3  ;;  %v1920_v4 = vpop.f32.mrb[18].mxu1  ;;  %v3508_v12 = vpack.c.bf16 %v1842_v14, %v1840_v18 }
 0x263   : > { %v1922_v23 = vpop.f32.mrb[19].mxu1 }
 0x264   : > { %2989 = vst [vmem:[%s5433_s5 + $0x240] sm:$0xff] %v3553_v0  ;;  %2944 = vst [vmem:[%s5433_s5 + $0xd8] sm:$0xff] %v3508_v12  ;;  %v3556_v49 = vpack.c.bf16 %v1922_v23, %v1920_v4 }
 0x266   : > { %2992 = vst [vmem:[%s5433_s5 + $0x258] sm:$0xff] %v3556_v49  ;;  %v1846_v53 = vpop.f32.mrb[20].mxu0 }
 0x267   : > { %v1848_v2 = vpop.f32.mrb[21].mxu0 }
 0x268   : > { %v1926_v34 = vpop.f32.mrb[20].mxu1  ;;  %v3511_v59 = vpack.c.bf16 %v1848_v2, %v1846_v53  ;;  %v1850_v28 = vpop.f32.mrb[22].mxu0 }
 0x269   : > { %v1928_v54 = vpop.f32.mrb[21].mxu1  ;;  %v1852_v60 = vpop.f32.mrb[23].mxu0 }
 0x26a   : > { %2947 = vst [vmem:[%s5433_s5 + $0xf0] sm:$0xff] %v3511_v59  ;;  %v3559_v10 = vpack.c.bf16 %v1928_v54, %v1926_v34  ;;  %v1930_v39 = vpop.f32.mrb[22].mxu1  ;;  %v3514_v7 = vpack.c.bf16 %v1852_v60, %v1850_v28 }
 0x26b   : > { %v1932_v63 = vpop.f32.mrb[23].mxu1 }
 0x26c   : > { %2995 = vst [vmem:[%s5433_s5 + $0x270] sm:$0xff] %v3559_v10  ;;  %2950 = vst [vmem:[%s5433_s5 + $0x108] sm:$0xff] %v3514_v7  ;;  %v3562_v24 = vpack.c.bf16 %v1932_v63, %v1930_v39 }
 0x26e   : > { %2998 = vst [vmem:[%s5433_s5 + $0x288] sm:$0xff] %v3562_v24  ;;  %v1856_v40 = vpop.f32.mrb[24].mxu0 }
 0x26f   : > { %v1858_v29 = vpop.f32.mrb[25].mxu0 }
 0x270   : > { %v1936_v42 = vpop.f32.mrb[24].mxu1  ;;  %v3517_v32 = vpack.c.bf16 %v1858_v29, %v1856_v40  ;;  %v1860_v38 = vpop.f32.mrb[26].mxu0 }
 0x271   : > { %v1938_v11 = vpop.f32.mrb[25].mxu1  ;;  %v1862_v20 = vpop.f32.mrb[27].mxu0 }
 0x272   : > { %2953 = vst [vmem:[%s5433_s5 + $0x120] sm:$0xff] %v3517_v32  ;;  %v3565_v1 = vpack.c.bf16 %v1938_v11, %v1936_v42  ;;  %v1940_v27 = vpop.f32.mrb[26].mxu1  ;;  %v3520_v8 = vpack.c.bf16 %v1862_v20, %v1860_v38 }
 0x273   : > { %v1942_v19 = vpop.f32.mrb[27].mxu1 }
 0x274   : > { %3001 = vst [vmem:[%s5433_s5 + $0x2a0] sm:$0xff] %v3565_v1  ;;  %2956 = vst [vmem:[%s5433_s5 + $0x138] sm:$0xff] %v3520_v8  ;;  %v3568_v16 = vpack.c.bf16 %v1942_v19, %v1940_v27 }
 0x276   : > { %3004 = vst [vmem:[%s5433_s5 + $0x2b8] sm:$0xff] %v3568_v16  ;;  %v1866_v51 = vpop.f32.mrb[28].mxu0 }
 0x277   : > { %v1868_v44 = vpop.f32.mrb[29].mxu0 }
 0x278   : > { %v1946_v15 = vpop.f32.mrb[28].mxu1  ;;  %v3523_v43 = vpack.c.bf16 %v1868_v44, %v1866_v51  ;;  %v1870_v45 = vpop.f32.mrb[30].mxu0 }
 0x279   : > { %v1948_v41 = vpop.f32.mrb[29].mxu1  ;;  %v1872_v33 = vpop.f32.mrb[31].mxu0 }
 0x27a   : > { %2959 = vst [vmem:[%s5433_s5 + $0x150] sm:$0xff] %v3523_v43  ;;  %v3571_v21 = vpack.c.bf16 %v1948_v41, %v1946_v15  ;;  %v1950_v48 = vpop.f32.mrb[30].mxu1  ;;  %v3526_v37 = vpack.c.bf16 %v1872_v33, %v1870_v45 }
 0x27b   : > { %v1952_v47 = vpop.f32.mrb[31].mxu1 }
 0x27c   : > { %3007 = vst [vmem:[%s5433_s5 + $0x2d0] sm:$0xff] %v3571_v21  ;;  %2962 = vst [vmem:[%s5433_s5 + $0x168] sm:$0xff] %v3526_v37  ;;  %v3574_v50 = vpack.c.bf16 %v1952_v47, %v1950_v48 }
 0x27e   : > { %3010 = vst [vmem:[%s5433_s5 + $0x2e8] sm:$0xff] %v3574_v50  ;;  %v2182_v26 = vpop.f32.mrb[32].mxu0 }
 0x27f   : > { %v2184_v56 = vpop.f32.mrb[33].mxu0 }
 0x280   : > { %v1989_v9 = vpop.f32.mrb[32].mxu1  ;;  %v3483_v35 = vpack.c.bf16 %v2184_v56, %v2182_v26  ;;  %v2186_v22 = vpop.f32.mrb[34].mxu0 }
 0x281   : > { %v1991_v62 = vpop.f32.mrb[33].mxu1  ;;  %v2188_v55 = vpop.f32.mrb[35].mxu0 }
 0x282   : > { %v3482_v58 = vpack.c.bf16 %v1991_v62, %v1989_v9  ;;  %2919 = vst [vmem:[%s5433_s5 + $0x10] sm:$0xff] %v3483_v35  ;;  %v1993_v46 = vpop.f32.mrb[34].mxu1  ;;  %v3486_v61 = vpack.c.bf16 %v2188_v55, %v2186_v22 }
 0x283   : > { %v1995_v17 = vpop.f32.mrb[35].mxu1 }
 0x284   : > { %4160 = shalt.err (!%p4157_p3)
}
 0x285   : > { %s4161_s20 = scalar_lea.hbm %s5476_s14, 4096  ;;  %s4165_s8 = scalar_lea.hbm %s5630_s3, 16384 }
 0x286   : > { %p4162_p12 = scmp.ne.s32.totalorder %s5476_s14, %s4161_s20  ;;  %p4166_p8 = scmp.lt.u32.totalorder %s5476_s14, %s5630_s3 }
 0x287   : > { %p4167_p1 = scmp.lt.u32.totalorder %s4165_s8, %s4161_s20  ;;  %p4169_p10 = scmp.lt.u32.totalorder %s4161_s20, %s5476_s14 }
 0x288   : > { %p4163_p4 = pnand %p4162_p12, %p5661_p11 }
 0x289   : > { %p4168_p7 = por %p4167_p1, %p4166_p8 }
 0x28a   : > { %p4164_p6 = pneg %p4163_p4 }
 0x28b   : > { %p4170_p13 = por %p4169_p10, %p4168_p7 }
 0x28d   : > { %p4171_p0 = pnand %p4170_p13, %p4164_p6 }
 0x28f   : > { %4174 = shalt.err (!%p4171_p0)
}
 0x290   : > { %s4291_s1 = smov 128   ;;  %s4292_s27 = smov 8   ;;  %2918 = vst [vmem:[%s5433_s5 + $0x8] sm:$0xff] %v3482_v58  ;;  %v3485_v36 = vpack.c.bf16 %v1995_v17, %v1993_v46  ;;  %2922 = vst [vmem:[%s5433_s5 + $0x28] sm:$0xff] %v3486_v61  ;;  %v2192_v6 = vpop.f32.mrb[36].mxu0  ;;  %v1999_v52 = vpop.f32.mrb[36].mxu1 }
 0x291   : > { %3623 = dma.vmem_to_hbm [thread:$0]  (%p5661_p11), %s5470_s10, 4096, %s5476_s14, %s3014_s6, %s4291_s1, %s4291_s1, %s4292_s27   ;;  %v2194_v25 = vpop.f32.mrb[37].mxu0  ;;  %v2001_v57 = vpop.f32.mrb[37].mxu1 }
 0x292   : > { %2921 = vst [vmem:[%s5433_s5 + $0x20] sm:$0xff] %v3485_v36  ;;  %v3489_v5 = vpack.c.bf16 %v2194_v25, %v2192_v6  ;;  %v2196_v30 = vpop.f32.mrb[38].mxu0  ;;  %v3488_v13 = vpack.c.bf16 %v2001_v57, %v1999_v52  ;;  %v2003_v18 = vpop.f32.mrb[38].mxu1  ;;  %s3611_s10 = smul.u32 192, %s4265_s18  ;;  %s3054_s18 = sshll.u32 %s5433_s5, 4  ;;  %s5565_s18 = int_to_ptr.vmem [resolvable:$true] %s3054_s18 }
 0x293   : > { %v2198_v3 = vpop.f32.mrb[39].mxu0  ;;  %v2005_v14 = vpop.f32.mrb[39].mxu1  ;;  %s3612_s12 = smul.u32 384, %s4269_s19  ;;  %s3019_s9 = scalar_lea.sflag [#allocation10], %s4518_s2 }
 0x294   : > { %2925 = vst [vmem:[%s5433_s5 + $0x40] sm:$0xff] %v3489_v5  ;;  %v3492_v31 = vpack.c.bf16 %v2198_v3, %v2196_v30  ;;  %2924 = vst [vmem:[%s5433_s5 + $0x38] sm:$0xff] %v3488_v13  ;;  %v3491_v0 = vpack.c.bf16 %v2005_v14, %v2003_v18  ;;  %v2202_v4 = vpop.f32.mrb[40].mxu0  ;;  %v2009_v23 = vpop.f32.mrb[40].mxu1  ;;  %s4175_s11 = scalar_lea.vmem %s5565_s18, 12288  ;;  %s4293_s20 = smov [#allocation9]  }
 0x295   : > { %v2204_v12 = vpop.f32.mrb[41].mxu0  ;;  %v2011_v2 = vpop.f32.mrb[41].mxu1  ;;  %s3051_s14 = sadd.s32 %s3612_s12, %s3611_s10  ;;  %p4176_p5 = scmp.ne.s32.totalorder %s5565_s18, %s4175_s11 }
 0x296   : > { %2928 = vst [vmem:[%s5433_s5 + $0x58] sm:$0xff] %v3492_v31  ;;  %2927 = vst [vmem:[%s5433_s5 + $0x50] sm:$0xff] %v3491_v0  ;;  %v3495_v49 = vpack.c.bf16 %v2204_v12, %v2202_v4  ;;  %v2206_v53 = vpop.f32.mrb[42].mxu0  ;;  %v3494_v59 = vpack.c.bf16 %v2011_v2, %v2009_v23  ;;  %v2013_v28 = vpop.f32.mrb[42].mxu1  ;;  %s3445_s19 = sshll.u32 %s3051_s14, 6  ;;  %s4179_s26 = sshll.u32 %s4293_s20, 4  ;;  %s4180_s26 = int_to_ptr.vmem [resolvable:$false] %s4179_s26 }
 0x297   : > { %v2208_v34 = vpop.f32.mrb[43].mxu0  ;;  %v2015_v60 = vpop.f32.mrb[43].mxu1  ;;  %s5572_s30 = scalar_lea.hbm %s5631_s4, %s3445_s19  ;;  %p4177_p9 = pnand %p4176_p5, %p5661_p11 }
 0x298   : > { %2931 = vst [vmem:[%s5433_s5 + $0x70] sm:$0xff] %v3495_v49  ;;  %v3498_v54 = vpack.c.bf16 %v2208_v34, %v2206_v53  ;;  %2930 = vst [vmem:[%s5433_s5 + $0x68] sm:$0xff] %v3494_v59  ;;  %v3497_v10 = vpack.c.bf16 %v2015_v60, %v2013_v28  ;;  %v2212_v39 = vpop.f32.mrb[44].mxu0  ;;  %v2019_v63 = vpop.f32.mrb[44].mxu1  ;;  %s4181_s28 = scalar_lea.vmem %s4180_s26, 24576  ;;  %p4182_p3 = scmp.lt.s32.totalorder %s5565_s18, %s4180_s26 }
 0x299   : > { %v2214_v7 = vpop.f32.mrb[45].mxu0  ;;  %v2021_v29 = vpop.f32.mrb[45].mxu1  ;;  %p4178_p2 = pneg %p4177_p9  ;;  %p4183_p12 = scmp.lt.s32.totalorder %s4181_s28, %s4175_s11 }
 0x29a   : > { %2934 = vst [vmem:[%s5433_s5 + $0x88] sm:$0xff] %v3498_v54  ;;  %2933 = vst [vmem:[%s5433_s5 + $0x80] sm:$0xff] %v3497_v10  ;;  %v3501_v24 = vpack.c.bf16 %v2214_v7, %v2212_v39  ;;  %v2216_v40 = vpop.f32.mrb[46].mxu0  ;;  %v3500_v32 = vpack.c.bf16 %v2021_v29, %v2019_v63  ;;  %v2023_v38 = vpop.f32.mrb[46].mxu1 }
 0x29b   : > { %v2218_v42 = vpop.f32.mrb[47].mxu0  ;;  %v2025_v20 = vpop.f32.mrb[47].mxu1  ;;  %p4184_p4 = por %p4183_p12, %p4182_p3 }
 0x29c   : > { %2937 = vst [vmem:[%s5433_s5 + $0xa0] sm:$0xff] %v3501_v24  ;;  %v3504_v11 = vpack.c.bf16 %v2218_v42, %v2216_v40  ;;  %2936 = vst [vmem:[%s5433_s5 + $0x98] sm:$0xff] %v3500_v32  ;;  %v3503_v1 = vpack.c.bf16 %v2025_v20, %v2023_v38 }
 0x29d   : > { %p4185_p6 = pnand %p4184_p4, %p4178_p2 }
 0x29e   : > { %2940 = vst [vmem:[%s5433_s5 + $0xb8] sm:$0xff] %v3504_v11  ;;  %2939 = vst [vmem:[%s5433_s5 + $0xb0] sm:$0xff] %v3503_v1  ;;  %v2222_v27 = vpop.f32.mrb[48].mxu0 }
 0x29f   : > { %v2224_v8 = vpop.f32.mrb[49].mxu0 }
 0x2a0   : > { %v2029_v19 = vpop.f32.mrb[48].mxu1  ;;  %v3507_v16 = vpack.c.bf16 %v2224_v8, %v2222_v27  ;;  %v2226_v51 = vpop.f32.mrb[50].mxu0 }
 0x2a1   : > { %v2031_v44 = vpop.f32.mrb[49].mxu1  ;;  %v2228_v15 = vpop.f32.mrb[51].mxu0 }
 0x2a2   : > { %v3506_v43 = vpack.c.bf16 %v2031_v44, %v2029_v19  ;;  %2943 = vst [vmem:[%s5433_s5 + $0xd0] sm:$0xff] %v3507_v16  ;;  %v2033_v45 = vpop.f32.mrb[50].mxu1  ;;  %v3510_v41 = vpack.c.bf16 %v2228_v15, %v2226_v51 }
 0x2a3   : > { %v2035_v33 = vpop.f32.mrb[51].mxu1 }
 0x2a4   : > { %2942 = vst [vmem:[%s5433_s5 + $0xc8] sm:$0xff] %v3506_v43  ;;  %v3509_v21 = vpack.c.bf16 %v2035_v33, %v2033_v45  ;;  %2946 = vst [vmem:[%s5433_s5 + $0xe8] sm:$0xff] %v3510_v41 }
 0x2a6   : > { %2945 = vst [vmem:[%s5433_s5 + $0xe0] sm:$0xff] %v3509_v21  ;;  %v2232_v48 = vpop.f32.mrb[52].mxu0 }
 0x2a7   : > { %v2234_v37 = vpop.f32.mrb[53].mxu0 }
 0x2a8   : > { %v2039_v47 = vpop.f32.mrb[52].mxu1  ;;  %v3513_v50 = vpack.c.bf16 %v2234_v37, %v2232_v48  ;;  %v2236_v26 = vpop.f32.mrb[54].mxu0 }
 0x2a9   : > { %v2041_v56 = vpop.f32.mrb[53].mxu1  ;;  %v2238_v9 = vpop.f32.mrb[55].mxu0 }
 0x2aa   : > { %v3512_v35 = vpack.c.bf16 %v2041_v56, %v2039_v47  ;;  %2949 = vst [vmem:[%s5433_s5 + $0x100] sm:$0xff] %v3513_v50  ;;  %v2043_v22 = vpop.f32.mrb[54].mxu1  ;;  %v3516_v62 = vpack.c.bf16 %v2238_v9, %v2236_v26 }
 0x2ab   : > { %v2045_v55 = vpop.f32.mrb[55].mxu1 }
 0x2ac   : > { %2948 = vst [vmem:[%s5433_s5 + $0xf8] sm:$0xff] %v3512_v35  ;;  %v3515_v58 = vpack.c.bf16 %v2045_v55, %v2043_v22  ;;  %2952 = vst [vmem:[%s5433_s5 + $0x118] sm:$0xff] %v3516_v62 }
 0x2ae   : > { %2951 = vst [vmem:[%s5433_s5 + $0x110] sm:$0xff] %v3515_v58  ;;  %v2242_v46 = vpop.f32.mrb[56].mxu0 }
 0x2af   : > { %v2244_v61 = vpop.f32.mrb[57].mxu0 }
 0x2b0   : > { %v2049_v17 = vpop.f32.mrb[56].mxu1  ;;  %v3519_v36 = vpack.c.bf16 %v2244_v61, %v2242_v46  ;;  %v2246_v6 = vpop.f32.mrb[58].mxu0 }
 0x2b1   : > { %v2051_v25 = vpop.f32.mrb[57].mxu1  ;;  %v2248_v52 = vpop.f32.mrb[59].mxu0 }
 0x2b2   : > { %v3518_v5 = vpack.c.bf16 %v2051_v25, %v2049_v17  ;;  %2955 = vst [vmem:[%s5433_s5 + $0x130] sm:$0xff] %v3519_v36  ;;  %v2053_v30 = vpop.f32.mrb[58].mxu1  ;;  %v3522_v57 = vpack.c.bf16 %v2248_v52, %v2246_v6 }
 0x2b3   : > { %v2055_v3 = vpop.f32.mrb[59].mxu1 }
 0x2b4   : > { %2954 = vst [vmem:[%s5433_s5 + $0x128] sm:$0xff] %v3518_v5  ;;  %v3521_v13 = vpack.c.bf16 %v2055_v3, %v2053_v30  ;;  %2958 = vst [vmem:[%s5433_s5 + $0x148] sm:$0xff] %v3522_v57 }
 0x2b6   : > { %2957 = vst [vmem:[%s5433_s5 + $0x140] sm:$0xff] %v3521_v13  ;;  %v2252_v18 = vpop.f32.mrb[60].mxu0 }
 0x2b7   : > { %v2254_v31 = vpop.f32.mrb[61].mxu0 }
 0x2b8   : > { %v2059_v14 = vpop.f32.mrb[60].mxu1  ;;  %v3525_v0 = vpack.c.bf16 %v2254_v31, %v2252_v18  ;;  %v2256_v4 = vpop.f32.mrb[62].mxu0 }
 0x2b9   : > { %v2061_v12 = vpop.f32.mrb[61].mxu1  ;;  %v2258_v23 = vpop.f32.mrb[63].mxu0 }
 0x2ba   : > { %v3524_v49 = vpack.c.bf16 %v2061_v12, %v2059_v14  ;;  %2961 = vst [vmem:[%s5433_s5 + $0x160] sm:$0xff] %v3525_v0  ;;  %v2063_v53 = vpop.f32.mrb[62].mxu1  ;;  %v3528_v2 = vpack.c.bf16 %v2258_v23, %v2256_v4 }
 0x2bb   : > { %v2065_v34 = vpop.f32.mrb[63].mxu1 }
 0x2bc   : > { %2960 = vst [vmem:[%s5433_s5 + $0x158] sm:$0xff] %v3524_v49  ;;  %v3527_v59 = vpack.c.bf16 %v2065_v34, %v2063_v53  ;;  %2964 = vst [vmem:[%s5433_s5 + $0x178] sm:$0xff] %v3528_v2 }
 0x2be   : > { %2963 = vst [vmem:[%s5433_s5 + $0x170] sm:$0xff] %v3527_v59  ;;  %v2262_v28 = vpop.f32.mrb[64].mxu0 }
 0x2bf   : > { %v2264_v54 = vpop.f32.mrb[65].mxu0 }
 0x2c0   : > { %v2069_v60 = vpop.f32.mrb[64].mxu1  ;;  %v3531_v10 = vpack.c.bf16 %v2264_v54, %v2262_v28  ;;  %v2266_v39 = vpop.f32.mrb[66].mxu0 }
 0x2c1   : > { %v2071_v7 = vpop.f32.mrb[65].mxu1  ;;  %v2268_v63 = vpop.f32.mrb[67].mxu0 }
 0x2c2   : > { %v3530_v24 = vpack.c.bf16 %v2071_v7, %v2069_v60  ;;  %2967 = vst [vmem:[%s5433_s5 + $0x190] sm:$0xff] %v3531_v10  ;;  %v2073_v40 = vpop.f32.mrb[66].mxu1  ;;  %v3534_v29 = vpack.c.bf16 %v2268_v63, %v2266_v39 }
 0x2c3   : > { %v2075_v42 = vpop.f32.mrb[67].mxu1 }
 0x2c4   : > { %2966 = vst [vmem:[%s5433_s5 + $0x188] sm:$0xff] %v3530_v24  ;;  %v3533_v32 = vpack.c.bf16 %v2075_v42, %v2073_v40  ;;  %2970 = vst [vmem:[%s5433_s5 + $0x1a8] sm:$0xff] %v3534_v29 }
 0x2c6   : > { %2969 = vst [vmem:[%s5433_s5 + $0x1a0] sm:$0xff] %v3533_v32  ;;  %v2272_v38 = vpop.f32.mrb[68].mxu0 }
 0x2c7   : > { %v2274_v11 = vpop.f32.mrb[69].mxu0 }
 0x2c8   : > { %v2079_v20 = vpop.f32.mrb[68].mxu1  ;;  %v3537_v1 = vpack.c.bf16 %v2274_v11, %v2272_v38  ;;  %v2276_v27 = vpop.f32.mrb[70].mxu0 }
 0x2c9   : > { %v2081_v8 = vpop.f32.mrb[69].mxu1  ;;  %v2278_v19 = vpop.f32.mrb[71].mxu0 }
 0x2ca   : > { %v3536_v16 = vpack.c.bf16 %v2081_v8, %v2079_v20  ;;  %2973 = vst [vmem:[%s5433_s5 + $0x1c0] sm:$0xff] %v3537_v1  ;;  %v2083_v51 = vpop.f32.mrb[70].mxu1  ;;  %v3540_v44 = vpack.c.bf16 %v2278_v19, %v2276_v27 }
 0x2cb   : > { %v2085_v15 = vpop.f32.mrb[71].mxu1 }
 0x2cc   : > { %2972 = vst [vmem:[%s5433_s5 + $0x1b8] sm:$0xff] %v3536_v16  ;;  %v3539_v43 = vpack.c.bf16 %v2085_v15, %v2083_v51  ;;  %2976 = vst [vmem:[%s5433_s5 + $0x1d8] sm:$0xff] %v3540_v44 }
 0x2ce   : > { %2975 = vst [vmem:[%s5433_s5 + $0x1d0] sm:$0xff] %v3539_v43  ;;  %v2282_v45 = vpop.f32.mrb[72].mxu0 }
 0x2cf   : > { %v2284_v41 = vpop.f32.mrb[73].mxu0 }
 0x2d0   : > { %v2089_v33 = vpop.f32.mrb[72].mxu1  ;;  %v3543_v21 = vpack.c.bf16 %v2284_v41, %v2282_v45  ;;  %v2286_v48 = vpop.f32.mrb[74].mxu0 }
 0x2d1   : > { %v2091_v37 = vpop.f32.mrb[73].mxu1  ;;  %v2288_v47 = vpop.f32.mrb[75].mxu0 }
 0x2d2   : > { %v3542_v50 = vpack.c.bf16 %v2091_v37, %v2089_v33  ;;  %2979 = vst [vmem:[%s5433_s5 + $0x1f0] sm:$0xff] %v3543_v21  ;;  %v2093_v26 = vpop.f32.mrb[74].mxu1  ;;  %v3546_v56 = vpack.c.bf16 %v2288_v47, %v2286_v48 }
 0x2d3   : > { %v2095_v9 = vpop.f32.mrb[75].mxu1 }
 0x2d4   : > { %2978 = vst [vmem:[%s5433_s5 + $0x1e8] sm:$0xff] %v3542_v50  ;;  %v3545_v35 = vpack.c.bf16 %v2095_v9, %v2093_v26  ;;  %2982 = vst [vmem:[%s5433_s5 + $0x208] sm:$0xff] %v3546_v56 }
 0x2d6   : > { %2981 = vst [vmem:[%s5433_s5 + $0x200] sm:$0xff] %v3545_v35  ;;  %v2292_v22 = vpop.f32.mrb[76].mxu0 }
 0x2d7   : > { %v2294_v62 = vpop.f32.mrb[77].mxu0 }
 0x2d8   : > { %v2099_v55 = vpop.f32.mrb[76].mxu1  ;;  %v3549_v58 = vpack.c.bf16 %v2294_v62, %v2292_v22  ;;  %v2296_v46 = vpop.f32.mrb[78].mxu0 }
 0x2d9   : > { %v2101_v61 = vpop.f32.mrb[77].mxu1  ;;  %v2298_v17 = vpop.f32.mrb[79].mxu0 }
 0x2da   : > { %v3548_v36 = vpack.c.bf16 %v2101_v61, %v2099_v55  ;;  %2985 = vst [vmem:[%s5433_s5 + $0x220] sm:$0xff] %v3549_v58  ;;  %v2103_v6 = vpop.f32.mrb[78].mxu1  ;;  %v3552_v25 = vpack.c.bf16 %v2298_v17, %v2296_v46 }
 0x2db   : > { %v2105_v52 = vpop.f32.mrb[79].mxu1 }
 0x2dc   : > { %2984 = vst [vmem:[%s5433_s5 + $0x218] sm:$0xff] %v3548_v36  ;;  %v3551_v5 = vpack.c.bf16 %v2105_v52, %v2103_v6  ;;  %2988 = vst [vmem:[%s5433_s5 + $0x238] sm:$0xff] %v3552_v25 }
 0x2de   : > { %2987 = vst [vmem:[%s5433_s5 + $0x230] sm:$0xff] %v3551_v5  ;;  %v2302_v30 = vpop.f32.mrb[80].mxu0 }
 0x2df   : > { %v2304_v57 = vpop.f32.mrb[81].mxu0 }
 0x2e0   : > { %v2109_v3 = vpop.f32.mrb[80].mxu1  ;;  %v3555_v13 = vpack.c.bf16 %v2304_v57, %v2302_v30  ;;  %v2306_v18 = vpop.f32.mrb[82].mxu0 }
 0x2e1   : > { %v2111_v31 = vpop.f32.mrb[81].mxu1  ;;  %v2308_v14 = vpop.f32.mrb[83].mxu0 }
 0x2e2   : > { %v3554_v0 = vpack.c.bf16 %v2111_v31, %v2109_v3  ;;  %2991 = vst [vmem:[%s5433_s5 + $0x250] sm:$0xff] %v3555_v13  ;;  %v2113_v4 = vpop.f32.mrb[82].mxu1  ;;  %v3558_v12 = vpack.c.bf16 %v2308_v14, %v2306_v18 }
 0x2e3   : > { %v2115_v23 = vpop.f32.mrb[83].mxu1 }
 0x2e4   : > { %2990 = vst [vmem:[%s5433_s5 + $0x248] sm:$0xff] %v3554_v0  ;;  %v3557_v49 = vpack.c.bf16 %v2115_v23, %v2113_v4  ;;  %2994 = vst [vmem:[%s5433_s5 + $0x268] sm:$0xff] %v3558_v12 }
 0x2e6   : > { %2993 = vst [vmem:[%s5433_s5 + $0x260] sm:$0xff] %v3557_v49  ;;  %v2312_v53 = vpop.f32.mrb[84].mxu0 }
 0x2e7   : > { %v2314_v2 = vpop.f32.mrb[85].mxu0 }
 0x2e8   : > { %v2119_v34 = vpop.f32.mrb[84].mxu1  ;;  %v3561_v59 = vpack.c.bf16 %v2314_v2, %v2312_v53  ;;  %v2316_v28 = vpop.f32.mrb[86].mxu0 }
 0x2e9   : > { %v2121_v54 = vpop.f32.mrb[85].mxu1  ;;  %v2318_v60 = vpop.f32.mrb[87].mxu0 }
 0x2ea   : > { %v3560_v10 = vpack.c.bf16 %v2121_v54, %v2119_v34  ;;  %2997 = vst [vmem:[%s5433_s5 + $0x280] sm:$0xff] %v3561_v59  ;;  %v2123_v39 = vpop.f32.mrb[86].mxu1  ;;  %v3564_v7 = vpack.c.bf16 %v2318_v60, %v2316_v28 }
 0x2eb   : > { %v2125_v63 = vpop.f32.mrb[87].mxu1 }
 0x2ec   : > { %2996 = vst [vmem:[%s5433_s5 + $0x278] sm:$0xff] %v3560_v10  ;;  %v3563_v24 = vpack.c.bf16 %v2125_v63, %v2123_v39  ;;  %3000 = vst [vmem:[%s5433_s5 + $0x298] sm:$0xff] %v3564_v7 }
 0x2ee   : > { %2999 = vst [vmem:[%s5433_s5 + $0x290] sm:$0xff] %v3563_v24  ;;  %v2322_v40 = vpop.f32.mrb[88].mxu0 }
 0x2ef   : > { %v2324_v29 = vpop.f32.mrb[89].mxu0 }
 0x2f0   : > { %v2129_v42 = vpop.f32.mrb[88].mxu1  ;;  %v3567_v32 = vpack.c.bf16 %v2324_v29, %v2322_v40  ;;  %v2326_v38 = vpop.f32.mrb[90].mxu0 }
 0x2f1   : > { %v2131_v11 = vpop.f32.mrb[89].mxu1  ;;  %v2328_v20 = vpop.f32.mrb[91].mxu0 }
 0x2f2   : > { %v3566_v1 = vpack.c.bf16 %v2131_v11, %v2129_v42  ;;  %3003 = vst [vmem:[%s5433_s5 + $0x2b0] sm:$0xff] %v3567_v32  ;;  %v2133_v27 = vpop.f32.mrb[90].mxu1  ;;  %v3570_v8 = vpack.c.bf16 %v2328_v20, %v2326_v38 }
 0x2f3   : > { %v2135_v19 = vpop.f32.mrb[91].mxu1 }
 0x2f4   : > { %3002 = vst [vmem:[%s5433_s5 + $0x2a8] sm:$0xff] %v3566_v1  ;;  %v3569_v16 = vpack.c.bf16 %v2135_v19, %v2133_v27  ;;  %3006 = vst [vmem:[%s5433_s5 + $0x2c8] sm:$0xff] %v3570_v8 }
 0x2f6   : > { %3005 = vst [vmem:[%s5433_s5 + $0x2c0] sm:$0xff] %v3569_v16  ;;  %v2332_v51 = vpop.f32.mrb[92].mxu0 }
 0x2f7   : > { %v2334_v44 = vpop.f32.mrb[93].mxu0 }
 0x2f8   : > { %v2139_v15 = vpop.f32.mrb[92].mxu1  ;;  %v3573_v43 = vpack.c.bf16 %v2334_v44, %v2332_v51  ;;  %v2336_v45 = vpop.f32.mrb[94].mxu0 }
 0x2f9   : > { %v2141_v41 = vpop.f32.mrb[93].mxu1  ;;  %v2338_v33 = vpop.f32.mrb[95].mxu0 }
 0x2fa   : > { %v3572_v21 = vpack.c.bf16 %v2141_v41, %v2139_v15  ;;  %3009 = vst [vmem:[%s5433_s5 + $0x2e0] sm:$0xff] %v3573_v43  ;;  %v2143_v48 = vpop.f32.mrb[94].mxu1  ;;  %v3576_v37 = vpack.c.bf16 %v2338_v33, %v2336_v45 }
 0x2fb   : > { %v2145_v47 = vpop.f32.mrb[95].mxu1 }
 0x2fc   : > { %3008 = vst [vmem:[%s5433_s5 + $0x2d8] sm:$0xff] %v3572_v21  ;;  %v3575_v50 = vpack.c.bf16 %v2145_v47, %v2143_v48  ;;  %3012 = vst [vmem:[%s5433_s5 + $0x2f8] sm:$0xff] %v3576_v37 }
 0x2fe   : > { %3011 = vst [vmem:[%s5433_s5 + $0x2f0] sm:$0xff] %v3575_v50 }
 0x2ff   : > { %4188 = shalt.err (!%p4185_p6)
}
 0x300   : > { %s4189_s5 = scalar_lea.hbm %s5572_s30, 12288  ;;  %s4193_s25 = scalar_lea.hbm %s5631_s4, 49152 }
 0x301   : > { %p4190_p8 = scmp.ne.s32.totalorder %s5572_s30, %s4189_s5  ;;  %p4194_p10 = scmp.lt.u32.totalorder %s5572_s30, %s5631_s4 }
 0x302   : > { %p4195_p13 = scmp.lt.u32.totalorder %s4193_s25, %s4189_s5  ;;  %p4197_p5 = scmp.lt.u32.totalorder %s4189_s5, %s5572_s30 }
 0x303   : > { %p4191_p1 = pnand %p4190_p8, %p5661_p11 }
 0x304   : > { %p4196_p0 = por %p4195_p13, %p4194_p10 }
 0x305   : > { %p4192_p7 = pneg %p4191_p1 }
 0x306   : > { %p4198_p9 = por %p4197_p5, %p4196_p0 }
 0x308   : > { %p4199_p2 = pnand %p4198_p9, %p4192_p7 }
 0x30a   : > { %4202 = shalt.err (!%p4199_p2)
}
 0x30b   : > { %s4294_s10 = smov 384   ;;  %s4295_s12 = smov 24  }
 0x30c   : > { %3624 = dma.vmem_to_hbm [thread:$0]  (%p5661_p11), %s5565_s18, 12288, %s5572_s30, %s3019_s9, %s4294_s10, %s4294_s10, %s4295_s12  }
 0x30d PF: > { %s5662_s14 = sld [smem:[#allocation16_spill]]  ;;  %p3650_p3 = scmp.ge.s32.totalorder %s4281_s22, 2 }
 0x30e   : > { %s3069_s19 = sand.u32 1, %s4253_s15  }
 0x30f   : > { %s3070_s6 = scalar_lea.sflag [#allocation4], %s3069_s19 }
 0x313   : > { %p5663_p12 = scmp.ne.s32.totalorder %s5662_s14, 0 }
 0x315   : > { %p3639_p4 = pnand %p3650_p3, %p5663_p12 }
 0x317   : > { %4244 = dma.done.wait (!%p3639_p4), %s3070_s6, 4096  }
 0x318   : > { %4246 = vsyncadd (!%p3639_p4), %s3070_s6, 4294963200  ;;  %s3079_s7 = scalar_lea.sflag [#allocation10], %s3069_s19 }
 0x319   : > { %4248 = dma.done.wait (!%p3639_p4), %s3079_s7, 12288  }
 0x31a   : > { %4250 = vsyncadd (!%p3639_p4), %s3079_s7, 4294955008  ;;  %s25_s22 = sadd.s32 1, %s4281_s22   ;;  %s5664_s18 = sld [smem:[#allocation15_spill]] }
 0x31b   : > { %p22_p6 = scmp.ge.s32.totalorder %s25_s22, 6   ;;  %s5665_s20 = sld [smem:[#allocation17_spill]] }
 0x31c   : > { %s5666_s15 = smov %s4257_s16  ;;  %s5667_s16 = smov %s4261_s17 }
 0x31d   : > { %s5668_s17 = smov %s4485_s13  ;;  %s5669_s19 = smov %s4277_s21 }
 0x31e   : > { %s5670_s21 = smov %s5676_s24  ;;  %24 = sbr.rel (!%p22_p6) target bundleno = 13 (0xd), region = 102 }
 0x325   :  { %3084 = vsyncpa [#allocation3], 1 }
 0x326   :  { %3086 = vsyncpa [#allocation3 + $0x1], 1 }
 0x327   :  { %3087 = vsyncpa [#allocation6], 1 }
 0x328   :  { %3088 = vsyncpa [#allocation4], 1 }
 0x329   :  { %3090 = vsyncpa [#allocation4 + $0x1], 1 }
 0x32a   :  { %3091 = vsyncpa [#allocation10], 1 }
 0x32b   :  { %3093 = vsyncpa [#allocation10 + $0x1], 1 }

</bundles_post_ra>
